<compile_context>
chip_gen: v5e
topology: v5e:2x2
jax: 0.10.0
libtpu: 0.0.40
codegen_flags: <defaults>
</compile_context>

<pallas_src>
import functools

import jax
import jax.numpy as jnp
from jax import lax
from jax.experimental import pallas as pl
from jax.experimental.pallas import tpu as pltpu


def _round_up(x, m):
    return (x + m - 1) // m * m


def _ocr_kernel(x_ref, p_ref,
                wp1_ref, bp1_ref, wp2_ref, bp2_ref,     # f_pixel  (2 x conv+bn+relu)
                wo1_ref, bo1_ref, wo2_ref, bo2_ref,     # f_object (2 x conv+bn+relu)
                wd_ref, bd_ref,                         # f_down   (conv+bn+relu)
                wu_ref, bu_ref,                         # f_up     (conv+bn+relu)
                wc_ctx_ref, wc_x_ref, bc_ref,           # conv_bn_dropout (split concat weight)
                out_ref,
                *, key_channels, lp_valid, lp_padded):
    bf16 = jnp.bfloat16
    x = x_ref[0]                       # (TILE_HW, C)   bf16
    p = p_ref[0]                       # (Lp_pad, C)    bf16

    def lin_relu(a_bf16, w_ref, b_ref):
        # bf16 x bf16 matmul on the MXU, f32 accumulation, f32 bias + relu.
        y = jnp.dot(a_bf16, w_ref[...],
                    preferred_element_type=jnp.float32) + b_ref[...]
        return jnp.maximum(y, 0.0)

    # query / key / value projections (1x1 convs with folded BN, ReLU).
    # key / value depend only on the tiny proxy -> recomputing them per HW
    # tile costs negligible FLOPs and keeps both grid axes fully parallel.
    query = lin_relu(lin_relu(x, wp1_ref, bp1_ref).astype(bf16),
                     wp2_ref, bp2_ref)                  # (TILE_HW, Kc) f32
    key = lin_relu(lin_relu(p, wo1_ref, bo1_ref).astype(bf16),
                   wo2_ref, bo2_ref)                    # (Lp_pad, Kc) f32
    value = lin_relu(p, wd_ref, bd_ref)                 # (Lp_pad, Kc) f32

    # sim = query @ key^T : contract last dims directly (no explicit .T).
    sim = lax.dot_general(query.astype(bf16), key.astype(bf16),
                          (((1,), (1,)), ((), ())),
                          preferred_element_type=jnp.float32)   # (TILE_HW, Lp_pad)
    sim = sim * jnp.float32(key_channels ** -0.5)

    if lp_padded != lp_valid:
        # mask padded proxy positions out of the softmax
        col = lax.broadcasted_iota(jnp.int32, sim.shape, 1)
        sim = jnp.where(col < lp_valid, sim, jnp.float32(-1e30))

    sim = sim - jnp.max(sim, axis=-1, keepdims=True)
    e = jnp.exp(sim)
    attn = e * pl.reciprocal(jnp.sum(e, axis=-1, keepdims=True), approx=True)

    context = jnp.dot(attn.astype(bf16), value.astype(bf16),
                      preferred_element_type=jnp.float32)       # (TILE_HW, Kc)
    context = lin_relu(context.astype(bf16), wu_ref, bu_ref)    # (TILE_HW, C)

    # concat([context, x], channel) @ W_cat == context @ W_ctx + x @ W_x
    out = (jnp.dot(context.astype(bf16), wc_ctx_ref[...],
                   preferred_element_type=jnp.float32)
           + jnp.dot(x, wc_x_ref[...], preferred_element_type=jnp.float32)
           + bc_ref[...])
    out = jnp.maximum(out, 0.0)                                 # (TILE_HW, Cout_pad)
    out_ref[0] = out.astype(out_ref.dtype)


def _fold_bn(w, gamma, beta, mean, var, eps=1e-5):
    """Fold a 1x1 conv weight (Cin, Cout) with a following BatchNorm (eval)."""
    s = gamma / jnp.sqrt(var + eps)
    return w * s[None, :], beta - mean * s


def spatial_ocr_forward(feats_nchw, proxy_nchw, params, key_channels):
    """feats_nchw: (N,C,H,W), proxy_nchw: (N,C,Hp,Wp). Returns (N,Cout,H,W)."""
    N, C, H, W = feats_nchw.shape
    _, _, Hp, Wp = proxy_nchw.shape
    HW, Lp = H * W, Hp * Wp
    Kc = key_channels

    # NCHW -> (N, spatial, C) channel-last
    x = jnp.transpose(feats_nchw, (0, 2, 3, 1)).reshape(N, HW, C)
    p = jnp.transpose(proxy_nchw, (0, 2, 3, 1)).reshape(N, Lp, C)

    (wp1, bp1), (wp2, bp2) = params["f_pixel"]
    (wo1, bo1), (wo2, bo2) = params["f_object"]
    (wd, bd) = params["f_down"]
    (wu, bu) = params["f_up"]
    (wc, bc) = params["conv_cat"]           # wc: (2C, Cout)
    Cout = wc.shape[1]

    # ---- lane/sublane-friendly padding -------------------------------------
    Cout_pad = _round_up(Cout, 128)         # lane-dense output stores
    Lp_pad = _round_up(Lp, 8)               # sublane-friendly proxy length

    wc_ctx = jnp.zeros((C, Cout_pad), jnp.float32).at[:, :Cout].set(wc[:C])
    wc_x = jnp.zeros((C, Cout_pad), jnp.float32).at[:, :Cout].set(wc[C:])
    bc_pad = jnp.zeros((Cout_pad,), jnp.float32).at[:Cout].set(bc)

    if Lp_pad != Lp:
        p = jnp.pad(p, ((0, 0), (0, Lp_pad - Lp), (0, 0)))

    # ---- HW tiling (budgeted for v7x's 64 MiB VMEM per TensorCore) ---------
    per_row = (2 * C * 2                 # x tile, bf16, double-buffered
               + 2 * Cout_pad * 4        # out tile, f32, double-buffered
               + (2 * Kc + Lp_pad + C + Cout_pad) * 4)   # f32 intermediates
    budget = 40 * 1024 * 1024
    max_rows = max(8, budget // per_row)
    tile_cap = max(8, min(1024, max_rows) // 8 * 8)
    TILE_HW = min(tile_cap, _round_up(HW, 8))
    HW_pad = _round_up(HW, TILE_HW)
    if HW_pad != HW:
        x = jnp.pad(x, ((0, 0), (0, HW_pad - HW), (0, 0)))
    n_hw_tiles = HW_pad // TILE_HW

    # ---- dtype prep: bf16 MXU operands, f32 biases -------------------------
    x_bf = x.astype(jnp.bfloat16)
    p_bf = p.astype(jnp.bfloat16)

    def w16(w):
        return w.astype(jnp.bfloat16)

    def row(v):                          # biases as (1, K) f32 rows
        return v.reshape(1, -1).astype(jnp.float32)

    weight_args = [w16(wp1), row(bp1), w16(wp2), row(bp2),
                   w16(wo1), row(bo1), w16(wo2), row(bo2),
                   w16(wd), row(bd), w16(wu), row(bu),
                   w16(wc_ctx), w16(wc_x), row(bc_pad)]

    def full_spec(a):                    # whole-array block, constant index
        return pl.BlockSpec(a.shape, lambda n, j: (0, 0))

    # ---- VMEM budget / cost hints ------------------------------------------
    wbytes = sum(int(a.size) * a.dtype.itemsize for a in weight_args)
    tile_io = TILE_HW * C * 2 + Lp_pad * C * 2 + TILE_HW * Cout_pad * 4
    interm = TILE_HW * (2 * Kc + Lp_pad + C + Cout_pad) * 4
    vmem_limit = int(min(64 << 20,
                         max(16 << 20, 2 * (tile_io + wbytes) + 2 * interm)))

    flops_tile = 2 * TILE_HW * (C * Kc + Kc * Kc        # f_pixel
                                + 2 * Lp_pad * Kc        # attention matmuls
                                + Kc * C                 # f_up
                                + 2 * C * Cout_pad)      # concat conv
    flops_tile += 2 * Lp_pad * (2 * C * Kc + Kc * Kc)    # key/value (recomputed)
    cost = pl.CostEstimate(
        flops=int(N * n_hw_tiles * flops_tile),
        transcendentals=int(N * n_hw_tiles * TILE_HW * (Lp_pad + 1)),
        bytes_accessed=int(x_bf.size * 2 + N * n_hw_tiles * p_bf[0].size * 2
                           + N * n_hw_tiles * wbytes
                           + N * HW_pad * Cout_pad * 4))

    kernel = functools.partial(_ocr_kernel, key_channels=Kc,
                               lp_valid=Lp, lp_padded=Lp_pad)

    out = pl.pallas_call(
        kernel,
        out_shape=jax.ShapeDtypeStruct((N, HW_pad, Cout_pad), feats_nchw.dtype),
        grid_spec=pltpu.PrefetchScalarGridSpec(
            num_scalar_prefetch=0,
            grid=(N, n_hw_tiles),
            in_specs=[
                pl.BlockSpec((1, TILE_HW, C), lambda n, j: (n, j, 0)),   # x tile
                pl.BlockSpec((1, Lp_pad, C), lambda n, j: (n, 0, 0)),    # proxy
            ] + [full_spec(a) for a in weight_args],
            out_specs=pl.BlockSpec((1, TILE_HW, Cout_pad),
                                   lambda n, j: (n, j, 0)),
        ),
        compiler_params=pltpu.CompilerParams(
            dimension_semantics=("parallel", "parallel"),
            vmem_limit_bytes=vmem_limit),
        cost_estimate=cost,
    )(x_bf, p_bf, *weight_args)

    # (N, HW_pad, Cout_pad) -> slice padding -> (N, Cout, H, W)
    out = out[:, :HW, :Cout].reshape(N, H, W, Cout)
    return jnp.transpose(out, (0, 3, 1, 2))


def _make_params(key, in_channels, key_channels, out_channels):
    """Deterministic synthetic parameters (conv weights + folded BN)."""
    ks = iter(jax.random.split(key, 16))

    def conv_bn(cin, cout):
        w = jax.random.normal(next(ks), (cin, cout), jnp.float32) * 0.1
        gamma = 1.0 + 0.05 * jnp.arange(cout, dtype=jnp.float32) / cout
        beta = 0.01 * jnp.arange(cout, dtype=jnp.float32)
        mean = 0.02 * jnp.sin(jnp.arange(cout, dtype=jnp.float32))
        var = 1.0 + 0.1 * jnp.cos(jnp.arange(cout, dtype=jnp.float32)) ** 2
        return _fold_bn(w, gamma, beta, mean, var)

    C, Kc, Co = in_channels, key_channels, out_channels
    return {
        "f_pixel":  (conv_bn(C, Kc), conv_bn(Kc, Kc)),
        "f_object": (conv_bn(C, Kc), conv_bn(Kc, Kc)),
        "f_down":   conv_bn(C, Kc),
        "f_up":     conv_bn(Kc, C),
        "conv_cat": conv_bn(2 * C, Co),
    }


def _reference(feats, proxy, params, key_channels):
    """Pure-JAX f32 reference of the same math (for a sanity check)."""
    N, C, H, W = feats.shape
    _, _, Hp, Wp = proxy.shape
    x = jnp.transpose(feats, (0, 2, 3, 1)).reshape(N, H * W, C)
    p = jnp.transpose(proxy, (0, 2, 3, 1)).reshape(N, Hp * Wp, C)

    def lr(a, wb):
        w, b = wb
        return jnp.maximum(a @ w + b, 0.0)

    q = lr(lr(x, params["f_pixel"][0]), params["f_pixel"][1])
    k = lr(lr(p, params["f_object"][0]), params["f_object"][1])
    v = lr(p, params["f_down"])
    sim = jnp.einsum("nqc,nkc->nqk", q, k) * (key_channels ** -0.5)
    sim = jax.nn.softmax(sim, axis=-1)
    ctx = jnp.einsum("nqk,nkc->nqc", sim, v)
    ctx = lr(ctx, params["f_up"])
    out = lr(jnp.concatenate([ctx, x], axis=-1), params["conv_cat"])
    Cout = out.shape[-1]
    return jnp.transpose(out.reshape(N, H, W, Cout), (0, 3, 1, 2))


if __name__ == "__main__":
    N, C, H, W = 2, 32, 16, 16          # feats: N x C x H x W
    Kc, Cout = 16, 32                   # key_channels, out_channels
    Hp, Wp = 8, 1                       # proxy (object regions): N x C x 8 x 1

    key = jax.random.PRNGKey(0)
    k_feats, k_proxy, k_params = jax.random.split(key, 3)
    feats = jax.random.normal(k_feats, (N, C, H, W), jnp.float32)
    proxy = jax.random.normal(k_proxy, (N, C, Hp, Wp), jnp.float32)
    params = _make_params(k_params, C, Kc, Cout)

    out = spatial_ocr_forward(feats, proxy, params, Kc)
    out = jax.block_until_ready(out)

    ref = _reference(feats, proxy, params, Kc)
    assert out.shape == (N, Cout, H, W)
    # bf16 MXU operands + approx reciprocal -> compare against the f32
    # reference at a correspondingly looser tolerance.
    assert jnp.allclose(out, ref, rtol=1e-1, atol=1e-1), "mismatch vs JAX reference"
    print("KERNEL_OK")
</pallas_src>

<mosaic_0001>
module attributes {stable_mosaic.version = 11 : i64} {
  func.func @_ocr_kernel(%arg0: i32, %arg1: i32, %arg2: memref<1x256x32xbf16, #tpu.memory_space<vmem>>, %arg3: memref<1x8x32xbf16, #tpu.memory_space<vmem>>, %arg4: memref<32x16xbf16, #tpu.memory_space<vmem>>, %arg5: memref<1x16xf32, #tpu.memory_space<vmem>>, %arg6: memref<16x16xbf16, #tpu.memory_space<vmem>>, %arg7: memref<1x16xf32, #tpu.memory_space<vmem>>, %arg8: memref<32x16xbf16, #tpu.memory_space<vmem>>, %arg9: memref<1x16xf32, #tpu.memory_space<vmem>>, %arg10: memref<16x16xbf16, #tpu.memory_space<vmem>>, %arg11: memref<1x16xf32, #tpu.memory_space<vmem>>, %arg12: memref<32x16xbf16, #tpu.memory_space<vmem>>, %arg13: memref<1x16xf32, #tpu.memory_space<vmem>>, %arg14: memref<16x32xbf16, #tpu.memory_space<vmem>>, %arg15: memref<1x32xf32, #tpu.memory_space<vmem>>, %arg16: memref<32x128xbf16, #tpu.memory_space<vmem>>, %arg17: memref<32x128xbf16, #tpu.memory_space<vmem>>, %arg18: memref<1x128xf32, #tpu.memory_space<vmem>>, %arg19: memref<1x256x128xf32, #tpu.memory_space<vmem>>) attributes {dimension_semantics = [#tpu.dimension_semantics<parallel>, #tpu.dimension_semantics<parallel>], iteration_bounds = array<i64: 2, 1>, scalar_prefetch = 0 : i64, scratch_operands = 0 : i64, tpu.core_type = #tpu.core_type<tc>, window_params = [{transform_indices = @transform_0, window_bounds = array<i64: 1, 256, 32>}, {transform_indices = @transform_1, window_bounds = array<i64: 1, 8, 32>}, {pipeline_mode = #tpu.pipeline_mode<synchronous>, transform_indices = @transform_2, window_bounds = array<i64: 32, 16>}, {pipeline_mode = #tpu.pipeline_mode<synchronous>, transform_indices = @transform_3, window_bounds = array<i64: 1, 16>}, {pipeline_mode = #tpu.pipeline_mode<synchronous>, transform_indices = @transform_4, window_bounds = array<i64: 16, 16>}, {pipeline_mode = #tpu.pipeline_mode<synchronous>, transform_indices = @transform_5, window_bounds = array<i64: 1, 16>}, {pipeline_mode = #tpu.pipeline_mode<synchronous>, transform_indices = @transform_6, window_bounds = array<i64: 32, 16>}, {pipeline_mode = #tpu.pipeline_mode<synchronous>, transform_indices = @transform_7, window_bounds = array<i64: 1, 16>}, {pipeline_mode = #tpu.pipeline_mode<synchronous>, transform_indices = @transform_8, window_bounds = array<i64: 16, 16>}, {pipeline_mode = #tpu.pipeline_mode<synchronous>, transform_indices = @transform_9, window_bounds = array<i64: 1, 16>}, {pipeline_mode = #tpu.pipeline_mode<synchronous>, transform_indices = @transform_10, window_bounds = array<i64: 32, 16>}, {pipeline_mode = #tpu.pipeline_mode<synchronous>, transform_indices = @transform_11, window_bounds = array<i64: 1, 16>}, {pipeline_mode = #tpu.pipeline_mode<synchronous>, transform_indices = @transform_12, window_bounds = array<i64: 16, 32>}, {pipeline_mode = #tpu.pipeline_mode<synchronous>, transform_indices = @transform_13, window_bounds = array<i64: 1, 32>}, {pipeline_mode = #tpu.pipeline_mode<synchronous>, transform_indices = @transform_14, window_bounds = array<i64: 32, 128>}, {pipeline_mode = #tpu.pipeline_mode<synchronous>, transform_indices = @transform_15, window_bounds = array<i64: 32, 128>}, {pipeline_mode = #tpu.pipeline_mode<synchronous>, transform_indices = @transform_16, window_bounds = array<i64: 1, 128>}, {transform_indices = @transform_17, window_bounds = array<i64: 1, 256, 128>}]} {
    %c0 = arith.constant 0 : index
    %c0_0 = arith.constant 0 : index
    %c0_1 = arith.constant 0 : index
    %0 = vector.load %arg2[%c0, %c0_0, %c0_1] : memref<1x256x32xbf16, #tpu.memory_space<vmem>>, vector<1x256x32xbf16>
    %1 = vector.shape_cast %0 : vector<1x256x32xbf16> to vector<256x32xbf16>
    %c0_2 = arith.constant 0 : index
    %c0_3 = arith.constant 0 : index
    %c0_4 = arith.constant 0 : index
    %2 = vector.load %arg3[%c0_2, %c0_3, %c0_4] : memref<1x8x32xbf16, #tpu.memory_space<vmem>>, vector<1x8x32xbf16>
    %3 = vector.shape_cast %2 : vector<1x8x32xbf16> to vector<8x32xbf16>
    %c0_5 = arith.constant 0 : index
    %c0_6 = arith.constant 0 : index
    %4 = vector.load %arg4[%c0_5, %c0_6] : memref<32x16xbf16, #tpu.memory_space<vmem>>, vector<32x16xbf16>
    %cst = arith.constant dense<0.000000e+00> : vector<256x16xf32>
    %5 = tpu.matmul %1, %4, %cst {dimension_numbers = #tpu.dot_dimension_numbers<[1], [0], [0], [1], [0, 0, 1, 1], [], []>} : vector<256x32xbf16>, vector<32x16xbf16>, vector<256x16xf32> -> vector<256x16xf32>
    %c0_7 = arith.constant 0 : index
    %c0_8 = arith.constant 0 : index
    %6 = vector.load %arg5[%c0_7, %c0_8] : memref<1x16xf32, #tpu.memory_space<vmem>>, vector<1x16xf32>
    %7 = vector.broadcast %6 : vector<1x16xf32> to vector<256x16xf32>
    %8 = arith.addf %5, %7 : vector<256x16xf32>
    %cst_9 = arith.constant 0.000000e+00 : f32
    %9 = vector.broadcast %cst_9 : f32 to vector<256x16xf32>
    %10 = arith.maximumf %8, %9 : vector<256x16xf32>
    %11 = arith.truncf %10 : vector<256x16xf32> to vector<256x16xbf16>
    %c0_10 = arith.constant 0 : index
    %c0_11 = arith.constant 0 : index
    %12 = vector.load %arg6[%c0_10, %c0_11] : memref<16x16xbf16, #tpu.memory_space<vmem>>, vector<16x16xbf16>
    %cst_12 = arith.constant dense<0.000000e+00> : vector<256x16xf32>
    %13 = tpu.matmul %11, %12, %cst_12 {dimension_numbers = #tpu.dot_dimension_numbers<[1], [0], [0], [1], [0, 0, 1, 1], [], []>} : vector<256x16xbf16>, vector<16x16xbf16>, vector<256x16xf32> -> vector<256x16xf32>
    %c0_13 = arith.constant 0 : index
    %c0_14 = arith.constant 0 : index
    %14 = vector.load %arg7[%c0_13, %c0_14] : memref<1x16xf32, #tpu.memory_space<vmem>>, vector<1x16xf32>
    %15 = vector.broadcast %14 : vector<1x16xf32> to vector<256x16xf32>
    %16 = arith.addf %13, %15 : vector<256x16xf32>
    %cst_15 = arith.constant 0.000000e+00 : f32
    %17 = vector.broadcast %cst_15 : f32 to vector<256x16xf32>
    %18 = arith.maximumf %16, %17 : vector<256x16xf32>
    %c0_16 = arith.constant 0 : index
    %c0_17 = arith.constant 0 : index
    %19 = vector.load %arg8[%c0_16, %c0_17] : memref<32x16xbf16, #tpu.memory_space<vmem>>, vector<32x16xbf16>
    %cst_18 = arith.constant dense<0.000000e+00> : vector<8x16xf32>
    %20 = tpu.matmul %3, %19, %cst_18 {dimension_numbers = #tpu.dot_dimension_numbers<[1], [0], [0], [1], [0, 0, 1, 1], [], []>} : vector<8x32xbf16>, vector<32x16xbf16>, vector<8x16xf32> -> vector<8x16xf32>
    %c0_19 = arith.constant 0 : index
    %c0_20 = arith.constant 0 : index
    %21 = vector.load %arg9[%c0_19, %c0_20] : memref<1x16xf32, #tpu.memory_space<vmem>>, vector<1x16xf32>
    %22 = vector.broadcast %21 : vector<1x16xf32> to vector<8x16xf32>
    %23 = arith.addf %20, %22 : vector<8x16xf32>
    %cst_21 = arith.constant 0.000000e+00 : f32
    %24 = vector.broadcast %cst_21 : f32 to vector<8x16xf32>
    %25 = arith.maximumf %23, %24 : vector<8x16xf32>
    %26 = arith.truncf %25 : vector<8x16xf32> to vector<8x16xbf16>
    %c0_22 = arith.constant 0 : index
    %c0_23 = arith.constant 0 : index
    %27 = vector.load %arg10[%c0_22, %c0_23] : memref<16x16xbf16, #tpu.memory_space<vmem>>, vector<16x16xbf16>
    %cst_24 = arith.constant dense<0.000000e+00> : vector<8x16xf32>
    %28 = tpu.matmul %26, %27, %cst_24 {dimension_numbers = #tpu.dot_dimension_numbers<[1], [0], [0], [1], [0, 0, 1, 1], [], []>} : vector<8x16xbf16>, vector<16x16xbf16>, vector<8x16xf32> -> vector<8x16xf32>
    %c0_25 = arith.constant 0 : index
    %c0_26 = arith.constant 0 : index
    %29 = vector.load %arg11[%c0_25, %c0_26] : memref<1x16xf32, #tpu.memory_space<vmem>>, vector<1x16xf32>
    %30 = vector.broadcast %29 : vector<1x16xf32> to vector<8x16xf32>
    %31 = arith.addf %28, %30 : vector<8x16xf32>
    %cst_27 = arith.constant 0.000000e+00 : f32
    %32 = vector.broadcast %cst_27 : f32 to vector<8x16xf32>
    %33 = arith.maximumf %31, %32 : vector<8x16xf32>
    %c0_28 = arith.constant 0 : index
    %c0_29 = arith.constant 0 : index
    %34 = vector.load %arg12[%c0_28, %c0_29] : memref<32x16xbf16, #tpu.memory_space<vmem>>, vector<32x16xbf16>
    %cst_30 = arith.constant dense<0.000000e+00> : vector<8x16xf32>
    %35 = tpu.matmul %3, %34, %cst_30 {dimension_numbers = #tpu.dot_dimension_numbers<[1], [0], [0], [1], [0, 0, 1, 1], [], []>} : vector<8x32xbf16>, vector<32x16xbf16>, vector<8x16xf32> -> vector<8x16xf32>
    %c0_31 = arith.constant 0 : index
    %c0_32 = arith.constant 0 : index
    %36 = vector.load %arg13[%c0_31, %c0_32] : memref<1x16xf32, #tpu.memory_space<vmem>>, vector<1x16xf32>
    %37 = vector.broadcast %36 : vector<1x16xf32> to vector<8x16xf32>
    %38 = arith.addf %35, %37 : vector<8x16xf32>
    %cst_33 = arith.constant 0.000000e+00 : f32
    %39 = vector.broadcast %cst_33 : f32 to vector<8x16xf32>
    %40 = arith.maximumf %38, %39 : vector<8x16xf32>
    %41 = arith.truncf %18 : vector<256x16xf32> to vector<256x16xbf16>
    %42 = arith.truncf %33 : vector<8x16xf32> to vector<8x16xbf16>
    %cst_34 = arith.constant dense<0.000000e+00> : vector<256x8xf32>
    %43 = tpu.matmul %41, %42, %cst_34 {dimension_numbers = #tpu.dot_dimension_numbers<[1], [1], [0], [0], [0, 0, 1, 0], [], []>} : vector<256x16xbf16>, vector<8x16xbf16>, vector<256x8xf32> -> vector<256x8xf32>
    %cst_35 = arith.constant 2.500000e-01 : f32
    %44 = vector.broadcast %cst_35 : f32 to vector<256x8xf32>
    %45 = arith.mulf %43, %44 : vector<256x8xf32>
    %cst_36 = arith.constant dense<0xFF800000> : vector<256xf32>
    %46 = vector.multi_reduction <maximumf>, %45, %cst_36 [1] : vector<256x8xf32> to vector<256xf32>
    %47 = vector.shape_cast %46 : vector<256xf32> to vector<256x1xf32>
    %48 = vector.broadcast %47 : vector<256x1xf32> to vector<256x8xf32>
    %49 = arith.subf %45, %48 : vector<256x8xf32>
    %50 = math.exp %49 : vector<256x8xf32>
    %cst_37 = arith.constant dense<0.000000e+00> : vector<256xf32>
    %51 = vector.multi_reduction <add>, %50, %cst_37 [1] : vector<256x8xf32> to vector<256xf32>
    %52 = vector.shape_cast %51 : vector<256xf32> to vector<256x1xf32>
    %53 = tpu.reciprocal %52 {approx = true} : vector<256x1xf32> -> vector<256x1xf32>
    %54 = vector.broadcast %53 : vector<256x1xf32> to vector<256x8xf32>
    %55 = arith.mulf %50, %54 : vector<256x8xf32>
    %56 = arith.truncf %55 : vector<256x8xf32> to vector<256x8xbf16>
    %57 = arith.truncf %40 : vector<8x16xf32> to vector<8x16xbf16>
    %cst_38 = arith.constant dense<0.000000e+00> : vector<256x16xf32>
    %58 = tpu.matmul %56, %57, %cst_38 {dimension_numbers = #tpu.dot_dimension_numbers<[1], [0], [0], [1], [0, 0, 1, 1], [], []>} : vector<256x8xbf16>, vector<8x16xbf16>, vector<256x16xf32> -> vector<256x16xf32>
    %59 = arith.truncf %58 : vector<256x16xf32> to vector<256x16xbf16>
    %c0_39 = arith.constant 0 : index
    %c0_40 = arith.constant 0 : index
    %60 = vector.load %arg14[%c0_39, %c0_40] : memref<16x32xbf16, #tpu.memory_space<vmem>>, vector<16x32xbf16>
    %cst_41 = arith.constant dense<0.000000e+00> : vector<256x32xf32>
    %61 = tpu.matmul %59, %60, %cst_41 {dimension_numbers = #tpu.dot_dimension_numbers<[1], [0], [0], [1], [0, 0, 1, 1], [], []>} : vector<256x16xbf16>, vector<16x32xbf16>, vector<256x32xf32> -> vector<256x32xf32>
    %c0_42 = arith.constant 0 : index
    %c0_43 = arith.constant 0 : index
    %62 = vector.load %arg15[%c0_42, %c0_43] : memref<1x32xf32, #tpu.memory_space<vmem>>, vector<1x32xf32>
    %63 = vector.broadcast %62 : vector<1x32xf32> to vector<256x32xf32>
    %64 = arith.addf %61, %63 : vector<256x32xf32>
    %cst_44 = arith.constant 0.000000e+00 : f32
    %65 = vector.broadcast %cst_44 : f32 to vector<256x32xf32>
    %66 = arith.maximumf %64, %65 : vector<256x32xf32>
    %67 = arith.truncf %66 : vector<256x32xf32> to vector<256x32xbf16>
    %c0_45 = arith.constant 0 : index
    %c0_46 = arith.constant 0 : index
    %68 = vector.load %arg16[%c0_45, %c0_46] : memref<32x128xbf16, #tpu.memory_space<vmem>>, vector<32x128xbf16>
    %cst_47 = arith.constant dense<0.000000e+00> : vector<256x128xf32>
    %69 = tpu.matmul %67, %68, %cst_47 {dimension_numbers = #tpu.dot_dimension_numbers<[1], [0], [0], [1], [0, 0, 1, 1], [], []>} : vector<256x32xbf16>, vector<32x128xbf16>, vector<256x128xf32> -> vector<256x128xf32>
    %c0_48 = arith.constant 0 : index
    %c0_49 = arith.constant 0 : index
    %70 = vector.load %arg17[%c0_48, %c0_49] : memref<32x128xbf16, #tpu.memory_space<vmem>>, vector<32x128xbf16>
    %cst_50 = arith.constant dense<0.000000e+00> : vector<256x128xf32>
    %71 = tpu.matmul %1, %70, %cst_50 {dimension_numbers = #tpu.dot_dimension_numbers<[1], [0], [0], [1], [0, 0, 1, 1], [], []>} : vector<256x32xbf16>, vector<32x128xbf16>, vector<256x128xf32> -> vector<256x128xf32>
    %72 = arith.addf %69, %71 : vector<256x128xf32>
    %c0_51 = arith.constant 0 : index
    %c0_52 = arith.constant 0 : index
    %73 = vector.load %arg18[%c0_51, %c0_52] : memref<1x128xf32, #tpu.memory_space<vmem>>, vector<1x128xf32>
    %74 = vector.broadcast %73 : vector<1x128xf32> to vector<256x128xf32>
    %75 = arith.addf %72, %74 : vector<256x128xf32>
    %cst_53 = arith.constant 0.000000e+00 : f32
    %76 = vector.broadcast %cst_53 : f32 to vector<256x128xf32>
    %77 = arith.maximumf %75, %76 : vector<256x128xf32>
    %c0_54 = arith.constant 0 : index
    %c0_55 = arith.constant 0 : index
    %c0_56 = arith.constant 0 : index
    %78 = vector.load %arg19[%c0_54, %c0_55, %c0_56] : memref<1x256x128xf32, #tpu.memory_space<vmem>>, vector<1x256x128xf32>
    %79 = vector.shape_cast %78 : vector<1x256x128xf32> to vector<256x128xf32>
    %80 = vector.shape_cast %77 : vector<256x128xf32> to vector<1x256x128xf32>
    tpu.vector_store %arg19[%c0_54, %c0_55, %c0_56], %80 {strides = array<i32>} : memref<1x256x128xf32, #tpu.memory_space<vmem>>, vector<1x256x128xf32>,
    return
  }
  func.func @transform_0(%arg0: i32, %arg1: i32) -> (i32, i32, i32) {
    %c0_i32 = arith.constant 0 : i32
    %c0_i32_0 = arith.constant 0 : i32
    return %arg0, %arg1, %c0_i32 : i32, i32, i32
  }
  func.func @transform_1(%arg0: i32, %arg1: i32) -> (i32, i32, i32) {
    %c0_i32 = arith.constant 0 : i32
    %c0_i32_0 = arith.constant 0 : i32
    %c0_i32_1 = arith.constant 0 : i32
    return %arg0, %c0_i32, %c0_i32_0 : i32, i32, i32
  }
  func.func @transform_2(%arg0: i32, %arg1: i32) -> (i32, i32) {
    %c0_i32 = arith.constant 0 : i32
    %c0_i32_0 = arith.constant 0 : i32
    %c0_i32_1 = arith.constant 0 : i32
    return %c0_i32, %c0_i32_0 : i32, i32
  }
  func.func @transform_3(%arg0: i32, %arg1: i32) -> (i32, i32) {
    %c0_i32 = arith.constant 0 : i32
    %c0_i32_0 = arith.constant 0 : i32
    %c0_i32_1 = arith.constant 0 : i32
    return %c0_i32, %c0_i32_0 : i32, i32
  }
  func.func @transform_4(%arg0: i32, %arg1: i32) -> (i32, i32) {
    %c0_i32 = arith.constant 0 : i32
    %c0_i32_0 = arith.constant 0 : i32
    %c0_i32_1 = arith.constant 0 : i32
    return %c0_i32, %c0_i32_0 : i32, i32
  }
  func.func @transform_5(%arg0: i32, %arg1: i32) -> (i32, i32) {
    %c0_i32 = arith.constant 0 : i32
    %c0_i32_0 = arith.constant 0 : i32
    %c0_i32_1 = arith.constant 0 : i32
    return %c0_i32, %c0_i32_0 : i32, i32
  }
  func.func @transform_6(%arg0: i32, %arg1: i32) -> (i32, i32) {
    %c0_i32 = arith.constant 0 : i32
    %c0_i32_0 = arith.constant 0 : i32
    %c0_i32_1 = arith.constant 0 : i32
    return %c0_i32, %c0_i32_0 : i32, i32
  }
  func.func @transform_7(%arg0: i32, %arg1: i32) -> (i32, i32) {
    %c0_i32 = arith.constant 0 : i32
    %c0_i32_0 = arith.constant 0 : i32
    %c0_i32_1 = arith.constant 0 : i32
    return %c0_i32, %c0_i32_0 : i32, i32
  }
  func.func @transform_8(%arg0: i32, %arg1: i32) -> (i32, i32) {
    %c0_i32 = arith.constant 0 : i32
    %c0_i32_0 = arith.constant 0 : i32
    %c0_i32_1 = arith.constant 0 : i32
    return %c0_i32, %c0_i32_0 : i32, i32
  }
  func.func @transform_9(%arg0: i32, %arg1: i32) -> (i32, i32) {
    %c0_i32 = arith.constant 0 : i32
    %c0_i32_0 = arith.constant 0 : i32
    %c0_i32_1 = arith.constant 0 : i32
    return %c0_i32, %c0_i32_0 : i32, i32
  }
  func.func @transform_10(%arg0: i32, %arg1: i32) -> (i32, i32) {
    %c0_i32 = arith.constant 0 : i32
    %c0_i32_0 = arith.constant 0 : i32
    %c0_i32_1 = arith.constant 0 : i32
    return %c0_i32, %c0_i32_0 : i32, i32
  }
  func.func @transform_11(%arg0: i32, %arg1: i32) -> (i32, i32) {
    %c0_i32 = arith.constant 0 : i32
    %c0_i32_0 = arith.constant 0 : i32
    %c0_i32_1 = arith.constant 0 : i32
    return %c0_i32, %c0_i32_0 : i32, i32
  }
  func.func @transform_12(%arg0: i32, %arg1: i32) -> (i32, i32) {
    %c0_i32 = arith.constant 0 : i32
    %c0_i32_0 = arith.constant 0 : i32
    %c0_i32_1 = arith.constant 0 : i32
    return %c0_i32, %c0_i32_0 : i32, i32
  }
  func.func @transform_13(%arg0: i32, %arg1: i32) -> (i32, i32) {
    %c0_i32 = arith.constant 0 : i32
    %c0_i32_0 = arith.constant 0 : i32
    %c0_i32_1 = arith.constant 0 : i32
    return %c0_i32, %c0_i32_0 : i32, i32
  }
  func.func @transform_14(%arg0: i32, %arg1: i32) -> (i32, i32) {
    %c0_i32 = arith.constant 0 : i32
    %c0_i32_0 = arith.constant 0 : i32
    %c0_i32_1 = arith.constant 0 : i32
    return %c0_i32, %c0_i32_0 : i32, i32
  }
  func.func @transform_15(%arg0: i32, %arg1: i32) -> (i32, i32) {
    %c0_i32 = arith.constant 0 : i32
    %c0_i32_0 = arith.constant 0 : i32
    %c0_i32_1 = arith.constant 0 : i32
    return %c0_i32, %c0_i32_0 : i32, i32
  }
  func.func @transform_16(%arg0: i32, %arg1: i32) -> (i32, i32) {
    %c0_i32 = arith.constant 0 : i32
    %c0_i32_0 = arith.constant 0 : i32
    %c0_i32_1 = arith.constant 0 : i32
    return %c0_i32, %c0_i32_0 : i32, i32
  }
  func.func @transform_17(%arg0: i32, %arg1: i32) -> (i32, i32, i32) {
    %c0_i32 = arith.constant 0 : i32
    %c0_i32_0 = arith.constant 0 : i32
    return %arg0, %arg1, %c0_i32 : i32, i32, i32
  }
}

</mosaic_0001>

<bundles_post_ra>
// kernel: tpu_custom_call.1
= control target key start
LH: loop header
LB: loop body
LE: loop exit
PB: predicated region body
PF: predicated region fallthrough
CT: control target
= control target key end

     0   :  { %s4092_s0 = inlined_call_operand.vmem [shape: bf16[2,256,32], index: 0, kind: input, shape index: {}]   ;;  %s4093_s1 = inlined_call_operand.vmem [shape: bf16[2,8,32], index: 1, kind: input, shape index: {}]   ;;  %s4094_s2 = inlined_call_operand.vmem [shape: bf16[32,16], index: 2, kind: input, shape index: {}]   ;;  %s4095_s3 = inlined_call_operand.vmem [shape: f32[1,16], index: 3, kind: input, shape index: {}]   ;;  %s4096_s4 = inlined_call_operand.vmem [shape: bf16[16,16], index: 4, kind: input, shape index: {}]   ;;  %s4097_s5 = inlined_call_operand.vmem [shape: f32[1,16], index: 5, kind: input, shape index: {}]   ;;  %s4098_s6 = inlined_call_operand.vmem [shape: bf16[32,16], index: 6, kind: input, shape index: {}]   ;;  %s4099_s7 = inlined_call_operand.vmem [shape: f32[1,16], index: 7, kind: input, shape index: {}]   ;;  %s4100_s8 = inlined_call_operand.vmem [shape: bf16[16,16], index: 8, kind: input, shape index: {}]   ;;  %s4101_s9 = inlined_call_operand.vmem [shape: f32[1,16], index: 9, kind: input, shape index: {}]   ;;  %s4102_s10 = inlined_call_operand.vmem [shape: bf16[32,16], index: 10, kind: input, shape index: {}]   ;;  %s4103_s11 = inlined_call_operand.vmem [shape: f32[1,16], index: 11, kind: input, shape index: {}]   ;;  %s4104_s12 = inlined_call_operand.vmem [shape: bf16[16,32], index: 12, kind: input, shape index: {}]   ;;  %s4105_s13 = inlined_call_operand.vmem [shape: f32[1,32], index: 13, kind: input, shape index: {}]   ;;  %s4106_s14 = inlined_call_operand.vmem [shape: bf16[32,128], index: 14, kind: input, shape index: {}]   ;;  %s4107_s15 = inlined_call_operand.vmem [shape: bf16[32,128], index: 15, kind: input, shape index: {}]   ;;  %s4108_s16 = inlined_call_operand.vmem [shape: f32[1,128], index: 16, kind: input, shape index: {}]   ;;  %s4109_s17 = inlined_call_operand.hbm [shape: f32[2,256,128], index: 17, kind: output, shape index: {}]  }
   0x1   :  { %4114 = sst [smem:[#allocation10_spill]] %s4092_s0 }
   0x2   :  { %4115 = sst [smem:[#allocation11_spill]] %s4093_s1 }
   0x3   :  { %4116 = sst [smem:[#allocation12_spill]] %s4094_s2 }
   0x4   :  { %4117 = sst [smem:[#allocation13_spill]] %s4095_s3 }
   0x5   :  { %22 = vsyncpa [#allocation3], 0 }
   0x6   :  { %24 = vsyncpa [#allocation3 + $0x1], 0  ;;  %s3238_s24 = smov 0   ;;  %s3240_s25 = smov 0  }
   0x7   :  { %s3242_s26 = smov 0   ;;  %s3244_s27 = smov 0  }
   0x8   :  { %s3246_s28 = smov 0   ;;  %s3248_s29 = smov 0  }
   0x9 LB: > { %4118 = sst [smem:[#allocation5_spill]] %s3132_s26  ;;  %s2578_s0 = sadd.s32 4294967295, %s3144_s29   ;;  %s3144_s29 = sphi %s3248_s29, %s30_s29   ;;  %s3140_s28 = sphi %s3246_s28, %s4133_s28   ;;  %s3136_s27 = sphi %s3244_s27, %s4132_s27   ;;  %s3132_s26 = sphi %s3242_s26, %s4131_s26   ;;  %s3128_s25 = sphi %s3240_s25, %s4135_s25   ;;  %s3124_s24 = sphi %s3238_s24, %s4134_s24  }
   0xa   : > { %4119 = sst [smem:[#allocation6_spill]] %s3140_s28  ;;  %s2579_s30 = sadd.s32 4294967294, %s3144_s29  }
   0xb   : > { %s42_s18 = sadd.s32 1, %s3140_s28  ;;  %s420_s19 = sadd.s32 1, %s3132_s26 }
   0xc   : > { %p44_p0 = scmp.ge.s32.totalorder %s42_s18, 2  ;;  %p430_p1 = scmp.ne.s32.totalorder %s3132_s26, %s3128_s25 }
   0xd   : > { %p431_p2 = scmp.eq.s32.totalorder %s2578_s0, 1  ;;  %p436_p3 = scmp.ne.s32.totalorder %s3128_s25, %s3124_s24 }
   0xe   : > { %s4137_s18 = smov (%p44_p0, %s42_s18), 0  ;;  %p437_p5 = scmp.eq.s32.totalorder %s2579_s30, 1 }
   0xf   : > { %4120 = sst [smem:[#allocation7_spill]] %s4137_s18  ;;  %p3278_p4 = por %p431_p2, %p430_p1 }
  0x10   : > { %s415_s20 = ssub.s32 %s3140_s28, %s4137_s18  ;;  %p2582_p6 = scmp.ge.s32.totalorder %s3144_s29, 1 }
  0x11   : > { %p418_p7 = scmp.eq.s32.totalorder %s415_s20, 0  ;;  %p3285_p8 = por %p437_p5, %p436_p3 }
  0x12   : > { %p520_p9 = scmp.lt.s32.totalorder %s3144_s29, 3 }
  0x13   : > { %s4122_s21 = scalar_select %p3285_p8, 1, 0 }
  0x14   : > { %s3291_s22 = scalar_select %p418_p7, %s3132_s26, %s420_s19  }
  0x15   : > { %4123 = sst [smem:[#allocation8_spill]] %s4122_s21  ;;  %p521_p10 = pnand %p2582_p6, %p520_p9 }
  0x16   : > { %4124 = sst [smem:[#allocation9_spill]] %s3291_s22  ;;  %p581_p11 = scmp.lt.s32.totalorder (!%p521_p10), %s3136_s27, 1 }
  0x17   : > { %524 = sbr.rel (%p521_p10) target bundleno = 1640 (0x668), region = 88  ;;  %s4125_s2 = sld [smem:[#allocation12_spill]] (!%p521_p10) }
  0x18   : > { %s4126_s22 = sld [smem:[#allocation10_spill]] (!%p521_p10)  ;;  %s3086_s21 = scalar_lea.hbm (!%p521_p10), %s4109_s17, 512 }
  0x19   : > { %s4127_s19 = sld [smem:[#allocation11_spill]] (!%p521_p10) }
  0x1a   : > { %s4128_s3 = sld [smem:[#allocation13_spill]] (!%p521_p10) }
  0x1c   : > { %s582_s18 = scalar_select %p581_p11, %s3136_s27, 1  ;;  %vm729_vm0 = vcmask 261120   ;;  %v2844_v4 = vld [vmem:[%s4098_s6 + $0x8] sm:$0xff]  ;;  %v2843_v5 = vld [vmem:[%s4098_s6] sm:$0xff]  ;;  %vm927_vm1 = vcmask 130048   ;;  %vm1387_vm2 = vcmask 64512  }
  0x1d   : > { %v2841_v0 = vld [vmem:[%s4125_s2 + $0x8] sm:$0xff]  ;;  %v2840_v1 = vld [vmem:[%s4125_s2] sm:$0xff]  ;;  %1126 = vmatpush.bf16.msra.mxu2 %v2844_v4  ;;  %vm1805_vm3 = vcmask 1043456  }
  0x1e   : > { %784 = vmatpush.bf16.msra.mxu0 %v2841_v0  ;;  %2854 = vmatpush.bf16.msra.mxu3 %v2841_v0  ;;  %s2823_s28 = sshll.u32 %s582_s18, 7  ;;  %v2842_v13 = vld [vmem:[%s4096_s4] sm:$0xff] }
  0x1f   : > { %s3304_s26 = scalar_lea.vmem %s4126_s22, %s2823_s28  ;;  %s2586_s22 = sshll.u32 %s582_s18, 2  ;;  %983 = vmatpush.bf16.msra.mxu1 %v2842_v13  ;;  %v2845_v19 = vld [vmem:[%s4100_s8] sm:$0xff] }
  0x20   : > { %v2824_v2 = vld [vmem:[%s3304_s26] sm:$0xff]  ;;  %v2837_v3 = vld [vmem:[%s3304_s26 + $0x68] sm:$0xff]  ;;  %v2838_v7 = vld [vmem:[%s3304_s26 + $0x70] sm:$0xff]  ;;  %s593_s2 = scalar_lea.vmem %s4127_s19, %s2586_s22 }
  0x21   : > { %1127 = vmatpush.bf16.msra.mxu2 %v2843_v5  ;;  %v2825_v6 = vld [vmem:[%s3304_s26 + $0x8] sm:$0xff]  ;;  %v3321_v8 = vld [vmem:[%s593_s2] sm:$0xf]  ;;  %v2826_v9 = vld [vmem:[%s3304_s26 + $0x10] sm:$0xff]  ;;  %s577_s2 = sand.u32 1, %s3128_s25  }
  0x22   : > { %785 = vmatpush.bf16.msra.mxu0 %v2840_v1  ;;  %2855 = vmatpush.bf16.msra.mxu3 %v2840_v1  ;;  %v2839_v10 = vld [vmem:[%s3304_s26 + $0x78] sm:$0xff]  ;;  %v2828_v12 = vld [vmem:[%s3304_s26 + $0x20] sm:$0xff]  ;;  %v2829_v14 = vld [vmem:[%s3304_s26 + $0x28] sm:$0xff]  ;;  %s2583_s0 = sshll.u32 %s577_s2, 8 }
  0x23   : > { %v2827_v11 = vld [vmem:[%s3304_s26 + $0x18] sm:$0xff]  ;;  %v2830_v15 = vld [vmem:[%s3304_s26 + $0x30] sm:$0xff]  ;;  %v2832_v17 = vld [vmem:[%s3304_s26 + $0x40] sm:$0xff]  ;;  %s3937_s28 = scalar_lea.vmem [#allocation2], %s2583_s0 }
  0x24   : > { %2703 = vmatmul.msk.bf16.vlgmr.msra.gmra.mxu2 %vm729_vm0, %v3321_v8  ;;  %v2831_v16 = vld [vmem:[%s3304_s26 + $0x38] sm:$0xff]  ;;  %v3351_v20 = vld [vmem:[%s4128_s3] ss:$0 sm:$0xff]  ;;  %v2833_v31 = vld [vmem:[%s3304_s26 + $0x48] sm:$0xff]  ;;  %s2484_s20 = sshll.u32 %s3937_s28, 4  ;;  %s2485_s20 = int_to_ptr.vmem [resolvable:$true] %s2484_s20 }
  0x25   : > { %2659 = vmatmul.msk.bf16.vlgmr.msra.gmra.mxu0 %vm729_vm0, %v2824_v2  ;;  %2672 = vmatmul.msk.bf16.vlgmr.msra.gmra.mxu3 %vm729_vm0, %v2837_v3  ;;  %v2834_v47 = vld [vmem:[%s3304_s26 + $0x50] sm:$0xff]  ;;  %v2835_v63 = vld [vmem:[%s3304_s26 + $0x58] sm:$0xff]  ;;  %v2916_v5 = vld [vmem:[%s4099_s7] ss:$0 sm:$0xff] }
  0x26   : > { %2856 = vmatpush.bf16.msrb.mxu3 %v2842_v13 }
  0x2a   : > { %1157 = vmatpush.bf16.msra.mxu3 %v2845_v19 }
  0x35   : > { %2660 = vmatmul.msk.bf16.gmra.mxu0 %vm729_vm0, %v2825_v6  ;;  %2673 = vmatmul.msk.bf16.gmra.mxu3 %vm729_vm0, %v2838_v7 }
  0x45   : > { %2661 = vmatmul.msk.bf16.gmra.mxu0 %vm729_vm0, %v2826_v9  ;;  %2674 = vmatmul.msk.bf16.gmra.mxu3 %vm729_vm0, %v2839_v10 }
  0x55   : > { %2662 = vmatmul.msk.bf16.gmra.mxu0 %vm729_vm0, %v2827_v11 }
  0x65   : > { %2663 = vmatmul.msk.bf16.gmra.mxu0 %vm729_vm0, %v2828_v12 }
  0x75   : > { %2664 = vmatmul.msk.bf16.gmra.mxu0 %vm729_vm0, %v2829_v14  ;;  %v2836_v14 = vld [vmem:[%s3304_s26 + $0x60] sm:$0xff] }
  0x85   : > { %2665 = vmatmul.msk.bf16.gmra.mxu0 %vm729_vm0, %v2830_v15 }
  0x95   : > { %2666 = vmatmul.msk.bf16.gmra.mxu0 %vm729_vm0, %v2831_v16 }
  0xa2   : > { %v787_v18 = vpop.f32.mrf.mxu0 }
  0xa3   : > { %v788_v21 = vadd.f32 %v3351_v20, %v787_v18 }
  0xa5   : > { %2667 = vmatmul.msk.bf16.gmra.mxu0 %vm729_vm0, %v2832_v17  ;;  %v867_v24 = vmax.f32 %v788_v21, 0.0 }
  0xa7   : > { %v1129_v38 = vpop.f32.mrf.mxu2 }
  0xa8   : > { %v852_v22 = vpop.f32.mrf.mxu3  ;;  %v1130_v9 = vadd.f32 %v2916_v5, %v1129_v38 }
  0xa9   : > { %v853_v27 = vadd.f32 %v3351_v20, %v852_v22 }
  0xaa   : > { %v789_v23 = vpop.f32.mrf.mxu0  ;;  %v1133_v12 = vmax.f32 %v1130_v9, 0.0 }
  0xab   : > { %v790_v25 = vadd.f32 %v3351_v20, %v789_v23  ;;  %v893_v33 = vmax.f32 %v853_v27, 0.0 }
  0xac   : > { %v1134_v16 = vpack.c.bf16 %v1133_v12, %v1133_v12  ;;  %v2846_v12 = vld [vmem:[%s4102_s10] sm:$0xff] }
  0xad   : > { %v868_v26 = vmax.f32 %v790_v25, 0.0 }
  0xaf   : > { %v899_v28 = vpack.c.bf16 %v868_v26, %v867_v24  ;;  %v1131_v48 = vpop.f32.mrf.mxu2 }
  0xb0   : > { %v854_v29 = vpop.f32.mrf.mxu3 }
  0xb1   : > { %v855_v30 = vadd.f32 %v3351_v20, %v854_v29  ;;  %2679 = vmatmul.msk.bf16.vlgmr.msra.gmra.mxu1 %vm927_vm1, %v899_v28 }
  0xb2   : > { %v792_v32 = vpop.f32.mrf.mxu0 }
  0xb3   : > { %v894_v34 = vmax.f32 %v855_v30, 0.0  ;;  %v793_v36 = vadd.f32 %v3351_v20, %v792_v32 }
  0xb5   : > { %v912_v35 = vpack.c.bf16 %v894_v34, %v893_v33  ;;  %2668 = vmatmul.msk.bf16.gmra.mxu0 %vm729_vm0, %v2833_v31  ;;  %v869_v40 = vmax.f32 %v793_v36, 0.0 }
  0xb7   : > { %2692 = vmatmul.msk.bf16.vlgmr.msrb.gmra.mxu3 %vm927_vm1, %v912_v35 }
  0xb8   : > { %v857_v37 = vpop.f32.mrf.mxu3 }
  0xb9   : > { %v858_v43 = vadd.f32 %v3351_v20, %v857_v37 }
  0xba   : > { %v794_v39 = vpop.f32.mrf.mxu0 }
  0xbb   : > { %v795_v41 = vadd.f32 %v3351_v20, %v794_v39  ;;  %v895_v50 = vmax.f32 %v858_v43, 0.0 }
  0xbd   : > { %v870_v42 = vmax.f32 %v795_v41, 0.0 }
  0xbf   : > { %v900_v44 = vpack.c.bf16 %v870_v42, %v869_v40 }
  0xc0   : > { %v859_v45 = vpop.f32.mrf.mxu3 }
  0xc1   : > { %v860_v46 = vadd.f32 %v3351_v20, %v859_v45  ;;  %2680 = vmatmul.msk.bf16.gmra.mxu1 %vm927_vm1, %v900_v44 }
  0xc2   : > { %v797_v49 = vpop.f32.mrf.mxu0 }
  0xc3   : > { %v896_v51 = vmax.f32 %v860_v46, 0.0  ;;  %v798_v53 = vadd.f32 %v3351_v20, %v797_v49 }
  0xc5   : > { %2669 = vmatmul.msk.bf16.gmra.mxu0 %vm729_vm0, %v2834_v47  ;;  %v913_v52 = vpack.c.bf16 %v896_v51, %v895_v50  ;;  %v871_v56 = vmax.f32 %v798_v53, 0.0 }
  0xc7   : > { %2693 = vmatmul.msk.bf16.gmra.mxu3 %vm927_vm1, %v913_v52 }
  0xc8   : > { %v862_v54 = vpop.f32.mrf.mxu3 }
  0xc9   : > { %v863_v59 = vadd.f32 %v3351_v20, %v862_v54 }
  0xca   : > { %v799_v55 = vpop.f32.mrf.mxu0 }
  0xcb   : > { %v800_v57 = vadd.f32 %v3351_v20, %v799_v55  ;;  %v897_v1 = vmax.f32 %v863_v59, 0.0 }
  0xcd   : > { %v872_v58 = vmax.f32 %v800_v57, 0.0 }
  0xcf   : > { %v901_v60 = vpack.c.bf16 %v872_v58, %v871_v56 }
  0xd0   : > { %v864_v61 = vpop.f32.mrf.mxu3 }
  0xd1   : > { %v865_v62 = vadd.f32 %v3351_v20, %v864_v61  ;;  %2681 = vmatmul.msk.bf16.gmra.mxu1 %vm927_vm1, %v901_v60 }
  0xd2   : > { %v802_v0 = vpop.f32.mrf.mxu0 }
  0xd3   : > { %v898_v2 = vmax.f32 %v865_v62, 0.0  ;;  %v803_v4 = vadd.f32 %v3351_v20, %v802_v0 }
  0xd5   : > { %2670 = vmatmul.msk.bf16.gmra.mxu0 %vm729_vm0, %v2835_v63  ;;  %v914_v3 = vpack.c.bf16 %v898_v2, %v897_v1  ;;  %v873_v7 = vmax.f32 %v803_v4, 0.0 }
  0xd7   : > { %2694 = vmatmul.msk.bf16.gmra.mxu3 %vm927_vm1, %v914_v3 }
  0xda   : > { %v804_v6 = vpop.f32.mrf.mxu0 }
  0xdb   : > { %v805_v10 = vadd.f32 %v3351_v20, %v804_v6 }
  0xdd   : > { %v874_v11 = vmax.f32 %v805_v10, 0.0 }
  0xdf   : > { %v902_v13 = vpack.c.bf16 %v874_v11, %v873_v7  ;;  %v2847_v7 = vld [vmem:[%s4102_s10 + $0x8] sm:$0xff] }
  0xe0   : > { %1190 = vmatpush.bf16.msrb.mxu3 %v2847_v7 }
  0xe1   : > { %2682 = vmatmul.msk.bf16.gmra.mxu1 %vm927_vm1, %v902_v13 }
  0xe2   : > { %v807_v15 = vpop.f32.mrf.mxu0 }
  0xe3   : > { %v808_v17 = vadd.f32 %v3351_v20, %v807_v15 }
  0xe4   : > { %1191 = vmatpush.bf16.msrb.mxu3 %v2846_v12 }
  0xe5   : > { %2671 = vmatmul.msk.bf16.gmra.mxu0 %vm729_vm0, %v2836_v14  ;;  %v875_v19 = vmax.f32 %v808_v17, 0.0 }
  0xe7   : > { %2708 = vmatmul.msk.bf16.vlgmr.msra.gmra.mxu3 %vm927_vm1, %v1134_v16 }
  0xea   : > { %v809_v18 = vpop.f32.mrf.mxu0 }
  0xeb   : > { %v810_v21 = vadd.f32 %v3351_v20, %v809_v18 }
  0xed   : > { %v876_v22 = vmax.f32 %v810_v21, 0.0 }
  0xef   : > { %v903_v23 = vpack.c.bf16 %v876_v22, %v875_v19 }
  0xf1   : > { %2683 = vmatmul.msk.bf16.gmra.mxu1 %vm927_vm1, %v903_v23 }
  0xf2   : > { %v812_v24 = vpop.f32.mrf.mxu0 }
  0xf3   : > { %v813_v25 = vadd.f32 %v3351_v20, %v812_v24 }
  0xf5   : > { %v877_v27 = vmax.f32 %v813_v25, 0.0 }
  0xf7   : > { %2717 = vmatmul.msk.bf16.vlgmr.msrb.gmra.mxu3 %vm729_vm0, %v3321_v8 }
  0xfa   : > { %v814_v26 = vpop.f32.mrf.mxu0 }
  0xfb   : > { %v815_v28 = vadd.f32 %v3351_v20, %v814_v26 }
  0xfd   : > { %v878_v29 = vmax.f32 %v815_v28, 0.0  ;;  %v2918_v28 = vld [vmem:[%s4101_s9] ss:$0 sm:$0xff] }
  0xff   : > { %v904_v30 = vpack.c.bf16 %v878_v29, %v877_v27 }
 0x101   : > { %2684 = vmatmul.msk.bf16.gmra.mxu1 %vm927_vm1, %v904_v30 }
 0x102   : > { %v817_v31 = vpop.f32.mrf.mxu0 }
 0x103   : > { %v818_v32 = vadd.f32 %v3351_v20, %v817_v31 }
 0x105   : > { %v879_v34 = vmax.f32 %v818_v32, 0.0 }
 0x10a   : > { %v819_v33 = vpop.f32.mrf.mxu0 }
 0x10b   : > { %v820_v35 = vadd.f32 %v3351_v20, %v819_v33 }
 0x10d   : > { %v880_v36 = vmax.f32 %v820_v35, 0.0 }
 0x10f   : > { %v905_v37 = vpack.c.bf16 %v880_v36, %v879_v34  ;;  %v3439_v34 = vld [vmem:[%s4097_s5] ss:$0 sm:$0xff] }
 0x111   : > { %2685 = vmatmul.msk.bf16.gmra.mxu1 %vm927_vm1, %v905_v37 }
 0x112   : > { %v822_v38 = vpop.f32.mrf.mxu0 }
 0x113   : > { %v823_v39 = vadd.f32 %v3351_v20, %v822_v38 }
 0x115   : > { %v881_v41 = vmax.f32 %v823_v39, 0.0 }
 0x11a   : > { %v824_v40 = vpop.f32.mrf.mxu0 }
 0x11b   : > { %v825_v42 = vadd.f32 %v3351_v20, %v824_v40 }
 0x11d   : > { %v882_v43 = vmax.f32 %v825_v42, 0.0 }
 0x11f   : > { %v906_v44 = vpack.c.bf16 %v882_v43, %v881_v41 }
 0x121   : > { %2686 = vmatmul.msk.bf16.gmra.mxu1 %vm927_vm1, %v906_v44 }
 0x122   : > { %v827_v45 = vpop.f32.mrf.mxu0 }
 0x123   : > { %v828_v46 = vadd.f32 %v3351_v20, %v827_v45 }
 0x125   : > { %v883_v48 = vmax.f32 %v828_v46, 0.0 }
 0x12a   : > { %v829_v47 = vpop.f32.mrf.mxu0 }
 0x12b   : > { %v830_v49 = vadd.f32 %v3351_v20, %v829_v47 }
 0x12d   : > { %v884_v50 = vmax.f32 %v830_v49, 0.0 }
 0x12e   : > { %v985_v51 = vpop.f32.mrf.mxu1 }
 0x12f   : > { %v907_v52 = vpack.c.bf16 %v884_v50, %v883_v48  ;;  %v986_v38 = vadd.f32 %v3439_v34, %v985_v51 }
 0x131   : > { %2687 = vmatmul.msk.bf16.gmra.mxu1 %vm927_vm1, %v907_v52  ;;  %v1065_v43 = vmax.f32 %v986_v38, 0.0 }
 0x132   : > { %v832_v53 = vpop.f32.mrf.mxu0 }
 0x133   : > { %v833_v55 = vadd.f32 %v3351_v20, %v832_v53 }
 0x135   : > { %v885_v58 = vmax.f32 %v833_v55, 0.0 }
 0x136   : > { %v987_v54 = vpop.f32.mrf.mxu1 }
 0x137   : > { %v988_v39 = vadd.f32 %v3439_v34, %v987_v54 }
 0x139   : > { %v1066_v44 = vmax.f32 %v988_v39, 0.0 }
 0x13a   : > { %v834_v56 = vpop.f32.mrf.mxu0  ;;  %v3403_v57 = vpop.f32.mrf.mxu3 }
 0x13b   : > { %v835_v59 = vadd.f32 %v3351_v20, %v834_v56  ;;  %v1198_v46 = vpack.c.bf16 %v1066_v44, %v1065_v43 }
 0x13d   : > { %v886_v60 = vmax.f32 %v835_v59, 0.0 }
 0x13e   : > { %v990_v61 = vpop.f32.mrf.mxu1 }
 0x13f   : > { %v908_v62 = vpack.c.bf16 %v886_v60, %v885_v58  ;;  %v991_v48 = vadd.f32 %v3439_v34, %v990_v61 }
 0x141   : > { %2688 = vmatmul.msk.bf16.gmra.mxu1 %vm927_vm1, %v908_v62  ;;  %v1067_v50 = vmax.f32 %v991_v48, 0.0 }
 0x142   : > { %v837_v63 = vpop.f32.mrf.mxu0  ;;  %v3407_v0 = vpop.f32.mrf.mxu3 }
 0x143   : > { %v838_v2 = vadd.f32 %v3351_v20, %v837_v63 }
 0x145   : > { %v887_v5 = vmax.f32 %v838_v2, 0.0 }
 0x146   : > { %v992_v1 = vpop.f32.mrf.mxu1 }
 0x147   : > { %v993_v49 = vadd.f32 %v3439_v34, %v992_v1 }
 0x149   : > { %v1068_v51 = vmax.f32 %v993_v49, 0.0 }
 0x14a   : > { %v839_v3 = vpop.f32.mrf.mxu0  ;;  %v3410_v4 = vpop.f32.mrf.mxu3 }
 0x14b   : > { %v840_v6 = vadd.f32 %v3351_v20, %v839_v3  ;;  %v1199_v53 = vpack.c.bf16 %v1068_v51, %v1067_v50  ;;  %v1051_v50 = vadd.f32 %v3439_v34, %v3403_v57 }
 0x14d   : > { %v888_v9 = vmax.f32 %v840_v6, 0.0 }
 0x14e   : > { %v995_v10 = vpop.f32.mrf.mxu1 }
 0x14f   : > { %v909_v11 = vpack.c.bf16 %v888_v9, %v887_v5  ;;  %v996_v54 = vadd.f32 %v3439_v34, %v995_v10 }
 0x151   : > { %2689 = vmatmul.msk.bf16.gmra.mxu1 %vm927_vm1, %v909_v11  ;;  %v1069_v58 = vmax.f32 %v996_v54, 0.0 }
 0x152   : > { %v842_v13 = vpop.f32.mrf.mxu0  ;;  %v3420_v14 = vpop.f32.mrf.mxu3 }
 0x153   : > { %v843_v16 = vadd.f32 %v3351_v20, %v842_v13 }
 0x155   : > { %v889_v19 = vmax.f32 %v843_v16, 0.0 }
 0x156   : > { %v997_v15 = vpop.f32.mrf.mxu1 }
 0x157   : > { %v998_v55 = vadd.f32 %v3439_v34, %v997_v15 }
 0x159   : > { %v1070_v59 = vmax.f32 %v998_v55, 0.0  ;;  %v1091_v55 = vmax.f32 %v1051_v50, 0.0 }
 0x15a   : > { %v844_v17 = vpop.f32.mrf.mxu0  ;;  %v3425_v18 = vpop.f32.mrf.mxu3 }
 0x15b   : > { %v845_v21 = vadd.f32 %v3351_v20, %v844_v17  ;;  %v1200_v60 = vpack.c.bf16 %v1070_v59, %v1069_v58 }
 0x15d   : > { %v890_v22 = vmax.f32 %v845_v21, 0.0 }
 0x15e   : > { %v1000_v23 = vpop.f32.mrf.mxu1 }
 0x15f   : > { %v910_v24 = vpack.c.bf16 %v890_v22, %v889_v19  ;;  %v1001_v61 = vadd.f32 %v3439_v34, %v1000_v23 }
 0x161   : > { %2690 = vmatmul.msk.bf16.gmra.mxu1 %vm927_vm1, %v910_v24  ;;  %v1071_v2 = vmax.f32 %v1001_v61, 0.0 }
 0x162   : > { %v847_v25 = vpop.f32.mrf.mxu0  ;;  %v3429_v26 = vpop.f32.mrf.mxu3 }
 0x163   : > { %v848_v8 = vadd.f32 %v3351_v20, %v847_v25 }
 0x165   : > { %v891_v31 = vmax.f32 %v848_v8, 0.0 }
 0x166   : > { %v1002_v27 = vpop.f32.mrf.mxu1 }
 0x167   : > { %v1003_v63 = vadd.f32 %v3439_v34, %v1002_v27 }
 0x169   : > { %v1072_v3 = vmax.f32 %v1003_v63, 0.0 }
 0x16a   : > { %v849_v29 = vpop.f32.mrf.mxu0  ;;  %v1159_v30 = vpop.f32.mrf.mxu3 }
 0x16b   : > { %v850_v32 = vadd.f32 %v3351_v20, %v849_v29  ;;  %v1160_v33 = vadd.f32 %v2918_v28, %v1159_v30  ;;  %v1201_v5 = vpack.c.bf16 %v1072_v3, %v1071_v2  ;;  %v1056_v2 = vadd.f32 %v3439_v34, %v3410_v4 }
 0x16d   : > { %v892_v35 = vmax.f32 %v850_v32, 0.0  ;;  %v1163_v36 = vmax.f32 %v1160_v33, 0.0 }
 0x16e   : > { %v1005_v37 = vpop.f32.mrf.mxu1 }
 0x16f   : > { %v911_v40 = vpack.c.bf16 %v892_v35, %v891_v31  ;;  %v1214_v41 = vpack.c.bf16 %v1163_v36, %v1163_v36  ;;  %v1006_v7 = vadd.f32 %v3439_v34, %v1005_v37 }
 0x171   : > { %2691 = vmatmul.msk.bf16.gmra.mxu1 %vm927_vm1, %v911_v40  ;;  %v1264_v42 = vsel %vm927_vm1, %v1214_v41, 0  ;;  %v1073_v11 = vmax.f32 %v1006_v7, 0.0 }
 0x172   : > { %v1161_v20 = vpop.f32.mrf.mxu3  ;;  %1273 = vmatpush.bf16.xpose.msrb.mxu2 %v1264_v42  ;;  %2857 = vmatpush.bf16.xpose.msra.mxu3 %v1264_v42 }
 0x176   : > { %v1007_v45 = vpop.f32.mrf.mxu1 }
 0x177   : > { %v1008_v9 = vadd.f32 %v3439_v34, %v1007_v45 }
 0x179   : > { %2718 = vmatmul.msk.bf16.vlgmr.msrb.gmra.mxu2 %vm927_vm1, %v1198_v46  ;;  %v1074_v12 = vmax.f32 %v1008_v9, 0.0  ;;  %v1053_v46 = vadd.f32 %v3439_v34, %v3407_v0  ;;  %v1093_v9 = vmax.f32 %v1056_v2, 0.0 }
 0x17b   : > { %v1202_v13 = vpack.c.bf16 %v1074_v12, %v1073_v11 }
 0x17e   : > { %v1010_v47 = vpop.f32.mrf.mxu1 }
 0x17f   : > { %v1011_v19 = vadd.f32 %v3439_v34, %v1010_v47 }
 0x181   : > { %v1075_v22 = vmax.f32 %v1011_v19, 0.0 }
 0x186   : > { %v1012_v52 = vpop.f32.mrf.mxu1 }
 0x187   : > { %v1013_v21 = vadd.f32 %v3439_v34, %v1012_v52  ;;  %v1092_v52 = vmax.f32 %v1053_v46, 0.0 }
 0x189   : > { %2719 = vmatmul.msk.bf16.gmra.mxu2 %vm927_vm1, %v1199_v53  ;;  %v1076_v23 = vmax.f32 %v1013_v21, 0.0 }
 0x18b   : > { %v1203_v25 = vpack.c.bf16 %v1076_v23, %v1075_v22  ;;  %v1063_v22 = vadd.f32 %v3439_v34, %v3429_v26 }
 0x18e   : > { %v1015_v56 = vpop.f32.mrf.mxu1 }
 0x18f   : > { %v1016_v8 = vadd.f32 %v3439_v34, %v1015_v56  ;;  %v1211_v56 = vpack.c.bf16 %v1092_v52, %v1091_v55 }
 0x191   : > { %v1077_v29 = vmax.f32 %v1016_v8, 0.0  ;;  %v1096_v8 = vmax.f32 %v1063_v22, 0.0 }
 0x196   : > { %v1017_v62 = vpop.f32.mrf.mxu1 }
 0x197   : > { %v1018_v28 = vadd.f32 %v3439_v34, %v1017_v62  ;;  %v1058_v62 = vadd.f32 %v3439_v34, %v3420_v14 }
 0x199   : > { %2720 = vmatmul.msk.bf16.gmra.mxu2 %vm927_vm1, %v1200_v60  ;;  %v1078_v30 = vmax.f32 %v1018_v28, 0.0 }
 0x19b   : > { %v1204_v32 = vpack.c.bf16 %v1078_v30, %v1077_v29 }
 0x19e   : > { %v1020_v1 = vpop.f32.mrf.mxu1 }
 0x19f   : > { %v1021_v43 = vadd.f32 %v3439_v34, %v1020_v1 }
 0x1a1   : > { %v1079_v47 = vmax.f32 %v1021_v43, 0.0 }
 0x1a6   : > { %v1022_v6 = vpop.f32.mrf.mxu1 }
 0x1a7   : > { %v1023_v44 = vadd.f32 %v3439_v34, %v1022_v6 }
 0x1a9   : > { %2721 = vmatmul.msk.bf16.gmra.mxu2 %vm927_vm1, %v1201_v5  ;;  %v1080_v48 = vmax.f32 %v1023_v44, 0.0  ;;  %v1094_v5 = vmax.f32 %v1058_v62, 0.0 }
 0x1ab   : > { %v1205_v54 = vpack.c.bf16 %v1080_v48, %v1079_v47 }
 0x1ae   : > { %v1025_v10 = vpop.f32.mrf.mxu1 }
 0x1af   : > { %v1026_v59 = vadd.f32 %v3439_v34, %v1025_v10  ;;  %v1212_v10 = vpack.c.bf16 %v1094_v5, %v1093_v9 }
 0x1b1   : > { %v1081_v61 = vmax.f32 %v1026_v59, 0.0 }
 0x1b6   : > { %v1027_v15 = vpop.f32.mrf.mxu1 }
 0x1b7   : > { %v1028_v57 = vadd.f32 %v3439_v34, %v1027_v15  ;;  %v3519_v15 = vpop.f32.mrf.mxu3 }
 0x1b9   : > { %2722 = vmatmul.msk.bf16.gmra.mxu2 %vm927_vm1, %v1202_v13  ;;  %v1082_v63 = vmax.f32 %v1028_v57, 0.0 }
 0x1bb   : > { %v1206_v7 = vpack.c.bf16 %v1082_v63, %v1081_v61 }
 0x1be   : > { %v3458_v16 = vpop.f32.mrf.mxu1 }
 0x1bf   : > { %v1031_v14 = vadd.f32 %v3439_v34, %v3458_v16  ;;  %v1061_v16 = vadd.f32 %v3439_v34, %v3425_v18  ;;  %v1195_v29 = vpop.f32.mrf.mxu3 }
 0x1c1   : > { %v1083_v19 = vmax.f32 %v1031_v14, 0.0  ;;  %v1095_v30 = vmax.f32 %v1061_v16, 0.0 }
 0x1c6   : > { %v3460_v17 = vpop.f32.mrf.mxu1 }
 0x1c7   : > { %v1033_v12 = vadd.f32 %v3439_v34, %v3460_v17 }
 0x1c9   : > { %2723 = vmatmul.msk.bf16.gmra.mxu2 %vm927_vm1, %v1203_v25  ;;  %v1084_v21 = vmax.f32 %v1033_v12, 0.0 }
 0x1cb   : > { %v1207_v25 = vpack.c.bf16 %v1084_v21, %v1083_v19 }
 0x1ce   : > { %v3464_v24 = vpop.f32.mrf.mxu1 }
 0x1d6   : > { %v3467_v27 = vpop.f32.mrf.mxu1 }
 0x1d7   : > { %v1038_v43 = vadd.f32 %v3439_v34, %v3467_v27 }
 0x1d9   : > { %2724 = vmatmul.msk.bf16.gmra.mxu2 %vm927_vm1, %v1204_v32  ;;  %v1213_v32 = vpack.c.bf16 %v1096_v8, %v1095_v30 }
 0x1de   : > { %v3471_v31 = vpop.f32.mrf.mxu1 }
 0x1df   : > { %v1041_v47 = vadd.f32 %v3439_v34, %v3471_v31 }
 0x1e6   : > { %v3474_v33 = vpop.f32.mrf.mxu1 }
 0x1e7   : > { %v1043_v48 = vadd.f32 %v3439_v34, %v3474_v33 }
 0x1e9   : > { %2725 = vmatmul.msk.bf16.gmra.mxu2 %vm927_vm1, %v1205_v54  ;;  %v1088_v50 = vmax.f32 %v1043_v48, 0.0 }
 0x1ee   : > { %v1045_v35 = vpop.f32.mrf.mxu1 }
 0x1ef   : > { %v1046_v36 = vadd.f32 %v3439_v34, %v1045_v35 }
 0x1f1   : > { %v1089_v38 = vmax.f32 %v1046_v36, 0.0 }
 0x1f6   : > { %v1047_v37 = vpop.f32.mrf.mxu1 }
 0x1f7   : > { %v1048_v39 = vadd.f32 %v3439_v34, %v1047_v37 }
 0x1f9   : > { %v1090_v40 = vmax.f32 %v1048_v39, 0.0  ;;  %2726 = vmatmul.msk.bf16.gmra.mxu2 %vm927_vm1, %v1206_v7 }
 0x1fb   : > { %v1210_v41 = vpack.c.bf16 %v1090_v40, %v1089_v38 }
 0x1fc   : > { %v1275_v42 = vpop.f32.mrf.mxu2 }
 0x1fd   : > { %v3478_v20 = vmul.f32 0.25, %v1275_v42  ;;  %2730 = vmatmul.msk.bf16.vlgmr.msra.gmra.mxu3 %vm927_vm1, %v1210_v41  ;;  %v1036_v42 = vadd.f32 %v3439_v34, %v3464_v24 }
 0x1ff   : > { %v1388_v45 = vsel %vm1387_vm2, %v3478_v20, -inf  ;;  %v1085_v44 = vmax.f32 %v1036_v42, 0.0 }
 0x200   : > { %1389 = vmax.xlane.f32.xlu0 %v1388_v45  ;;  %v1086_v45 = vmax.f32 %v1038_v43, 0.0 }
 0x202   : > { %v1208_v46 = vpack.c.bf16 %v1086_v45, %v1085_v44 }
 0x204   : > { %v1277_v49 = vpop.f32.mrf.mxu2 }
 0x205   : > { %v3489_v51 = vmul.f32 0.25, %v1277_v49  ;;  %v1087_v49 = vmax.f32 %v1041_v47, 0.0 }
 0x207   : > { %v1391_v53 = vsel %vm1387_vm2, %v3489_v51, -inf  ;;  %v1209_v52 = vpack.c.bf16 %v1088_v50, %v1087_v49 }
 0x208   : > { %1392 = vmax.xlane.f32.xlu0 %v1391_v53 }
 0x209   : > { %2727 = vmatmul.msk.bf16.gmra.mxu2 %vm927_vm1, %v1207_v25 }
 0x20c   : > { %v1280_v58 = vpop.f32.mrf.mxu2 }
 0x20d   : > { %v3494_v0 = vmul.f32 0.25, %v1280_v58  ;;  %2731 = vmatmul.msk.bf16.gmra.mxu3 %vm927_vm1, %v1211_v56 }
 0x20f   : > { %v1394_v60 = vsel %vm1387_vm2, %v3494_v0, -inf }
 0x210   : > { %1395 = vmax.xlane.f32.xlu1 %v1394_v60 }
 0x214   : > { %v1282_v1 = vpop.f32.mrf.mxu2 }
 0x215   : > { %v3505_v3 = vmul.f32 0.25, %v1282_v1 }
 0x217   : > { %v1397_v6 = vsel %vm1387_vm2, %v3505_v3, -inf }
 0x218   : > { %1398 = vmax.xlane.f32.xlu1 %v1397_v6 }
 0x219   : > { %2728 = vmatmul.msk.bf16.gmra.mxu2 %vm927_vm1, %v1208_v46 }
 0x21c   : > { %v1285_v11 = vpop.f32.mrf.mxu2 }
 0x21d   : > { %v3514_v4 = vmul.f32 0.25, %v1285_v11  ;;  %2732 = vmatmul.msk.bf16.gmra.mxu3 %vm927_vm1, %v1212_v10 }
 0x21f   : > { %v1400_v13 = vsel %vm1387_vm2, %v3514_v4, -inf }
 0x220   : > { %1401 = vmax.xlane.f32.xlu2 %v1400_v13 }
 0x224   : > { %v1287_v23 = vpop.f32.mrf.mxu2 }
 0x225   : > { %v3525_v17 = vmul.f32 0.25, %v1287_v23 }
 0x227   : > { %v1403_v28 = vsel %vm1387_vm2, %v3525_v17, -inf }
 0x228   : > { %1404 = vmax.xlane.f32.xlu2 %v1403_v28 }
 0x229   : > { %2729 = vmatmul.msk.bf16.gmra.mxu2 %vm927_vm1, %v1209_v52 }
 0x22c   : > { %v1290_v35 = vpop.f32.mrf.mxu2 }
 0x22d   : > { %v3530_v36 = vmul.f32 0.25, %v1290_v35  ;;  %2733 = vmatmul.msk.bf16.gmra.mxu3 %vm927_vm1, %v1213_v32 }
 0x22f   : > { %v1406_v18 = vsel %vm1387_vm2, %v3530_v36, -inf }
 0x230   : > { %1407 = vmax.xlane.f32.xlu0 %v1406_v18 }
 0x234   : > { %v1292_v26 = vpop.f32.mrf.mxu2 }
 0x235   : > { %v3535_v37 = vmul.f32 0.25, %v1292_v26 }
 0x237   : > { %v1409_v38 = vsel %vm1387_vm2, %v3535_v37, -inf }
 0x238   : > { %1410 = vmax.xlane.f32.xlu1 %v1409_v38 }
 0x23c   : > { %v1295_v39 = vpop.f32.mrf.mxu2 }
 0x23d   : > { %v3539_v40 = vmul.f32 0.25, %v1295_v39 }
 0x23f   : > { %v1412_v41 = vsel %vm1387_vm2, %v3539_v40, -inf }
 0x240   : > { %1413 = vmax.xlane.f32.xlu1 %v1412_v41 }
 0x244   : > { %v1297_v53 = vpop.f32.mrf.mxu2 }
 0x245   : > { %v3559_v57 = vmul.f32 0.25, %v1297_v53 }
 0x247   : > { %v1415_v63 = vsel %vm1387_vm2, %v3559_v57, -inf }
 0x24c   : > { %v1300_v55 = vpop.f32.mrf.mxu2 }
 0x24d   : > { %v3568_v1 = vmul.f32 0.25, %v1300_v55 }
 0x24f   : > { %v1418_v10 = vsel %vm1387_vm2, %v3568_v1, -inf }
 0x254   : > { %v1302_v33 = vpop.f32.mrf.mxu2 }
 0x255   : > { %v3577_v11 = vmul.f32 0.25, %v1302_v33 }
 0x257   : > { %v1421_v22 = vsel %vm1387_vm2, %v3577_v11, -inf }
 0x25c   : > { %v1305_v6 = vpop.f32.mrf.mxu2 }
 0x25d   : > { %v3586_v23 = vmul.f32 0.25, %v1305_v6 }
 0x25f   : > { %v1424_v30 = vsel %vm1387_vm2, %v3586_v23, -inf }
 0x264   : > { %v1307_v19 = vpop.f32.mrf.mxu2 }
 0x265   : > { %v3595_v32 = vmul.f32 0.25, %v1307_v19 }
 0x267   : > { %v1427_v39 = vsel %vm1387_vm2, %v3595_v32, -inf }
 0x26c   : > { %v1310_v28 = vpop.f32.mrf.mxu2 }
 0x26d   : > { %v3604_v42 = vmul.f32 0.25, %v1310_v28 }
 0x273   : > { %v1390_v24 = vpop.xlane.xlu0 %1389 }
 0x274   : > { %v1484_v27 = vsub.f32 %v3478_v20, %v1390_v24  ;;  %v1312_v41 = vpop.f32.mrf.mxu2 }
 0x275   : > { %v3613_v48 = vmul.f32 0.25, %v1312_v41 }
 0x276   : > { %v1516_v54 = vmul.f32 1.442695, %v1484_v27 }
 0x278   : > { %2922 = vpow2.f32 %v1516_v54 }
 0x27b   : > { %v1393_v56 = vpop.xlane.xlu0 %1392 }
 0x27c   : > { %v1485_v58 = vsub.f32 %v3489_v51, %v1393_v56  ;;  %v1315_v49 = vpop.f32.mrf.mxu2 }
 0x27d   : > { %v3622_v54 = vmul.f32 0.25, %v1315_v49 }
 0x27e   : > { %v3555_v59 = vpop.eup %2922  ;;  %v1518_v31 = vmul.f32 1.442695, %v1485_v58 }
 0x27f   : > { %v1580_v34 = vsel %vm1387_vm2, %v3555_v59, 0.0  ;;  %v1436_v56 = vsel %vm1387_vm2, %v3622_v54, -inf }
 0x280   : > { %2924 = vpow2.f32 %v1518_v31  ;;  %1581 = vadd.xlane.f32.xlu2 %v1580_v34 }
 0x283   : > { %v1396_v60 = vpop.xlane.xlu1 %1395 }
 0x284   : > { %v1486_v20 = vsub.f32 %v3494_v0, %v1396_v60  ;;  %v1317_v55 = vpop.f32.mrf.mxu2 }
 0x285   : > { %v3630_v31 = vmul.f32 0.25, %v1317_v55 }
 0x286   : > { %v3562_v62 = vpop.eup %2924  ;;  %v1520_v61 = vmul.f32 1.442695, %v1486_v20 }
 0x287   : > { %v1583_v51 = vsel %vm1387_vm2, %v3562_v62, 0.0  ;;  %v1439_v34 = vsel %vm1387_vm2, %v3630_v31, -inf }
 0x288   : > { %2926 = vpow2.f32 %v1520_v61  ;;  %1584 = vadd.xlane.f32.xlu0 %v1583_v51  ;;  %1416 = vmax.xlane.f32.xlu2 %v1415_v63  ;;  %v2919_v61 = vld [vmem:[%s4103_s11] ss:$0 sm:$0xff] }
 0x289   : > { %v1194_v51 = vadd.f32 %v2919_v61, %v3519_v15 }
 0x28b   : > { %v1399_v2 = vpop.xlane.xlu1 %1398  ;;  %v1197_v63 = vmax.f32 %v1194_v51, 0.0 }
 0x28c   : > { %v1487_v5 = vsub.f32 %v3505_v3, %v1399_v2  ;;  %v1320_v33 = vpop.f32.mrf.mxu2 }
 0x28d   : > { %v3634_v60 = vmul.f32 0.25, %v1320_v33  ;;  %v1756_v2 = vpack.c.bf16 %v1197_v63, %v1197_v63 }
 0x28e   : > { %v3571_v7 = vpop.eup %2926  ;;  %v1522_v0 = vmul.f32 1.442695, %v1487_v5 }
 0x28f   : > { %v1586_v9 = vsel %vm1387_vm2, %v3571_v7, 0.0  ;;  %v1442_v20 = vsel %vm1387_vm2, %v3634_v60, -inf  ;;  %v1807_v5 = vsel %vm1805_vm3, %v1756_v2, 0 }
 0x290   : > { %2928 = vpow2.f32 %v1522_v0  ;;  %1587 = vadd.xlane.f32.xlu0 %v1586_v9  ;;  %1419 = vmax.xlane.f32.xlu2 %v1418_v10 }
 0x291   : > { %1816 = vmatpush.bf16.msrb.mxu3 %v1807_v5 }
 0x293   : > { %v1402_v14 = vpop.xlane.xlu2 %1401 }
 0x294   : > { %v1488_v12 = vsub.f32 %v3514_v4, %v1402_v14 }
 0x296   : > { %v3580_v13 = vpop.eup %2928  ;;  %v1524_v3 = vmul.f32 1.442695, %v1488_v12 }
 0x297   : > { %v1589_v21 = vsel %vm1387_vm2, %v3580_v13, 0.0 }
 0x298   : > { %2930 = vpow2.f32 %v1524_v3  ;;  %1590 = vadd.xlane.f32.xlu1 %v1589_v21  ;;  %1422 = vmax.xlane.f32.xlu0 %v1421_v22 }
 0x29b   : > { %v1405_v16 = vpop.xlane.xlu2 %1404 }
 0x29c   : > { %v1489_v25 = vsub.f32 %v3525_v17, %v1405_v16 }
 0x29e   : > { %v3589_v8 = vpop.eup %2930  ;;  %v1526_v4 = vmul.f32 1.442695, %v1489_v25 }
 0x29f   : > { %v1592_v29 = vsel %vm1387_vm2, %v3589_v8, 0.0 }
 0x2a0   : > { %2932 = vpow2.f32 %v1526_v4  ;;  %1593 = vadd.xlane.f32.xlu1 %v1592_v29  ;;  %1425 = vmax.xlane.f32.xlu0 %v1424_v30  ;;  %v1322_v29 = vpop.f32.mrf.mxu2 }
 0x2a3   : > { %v1408_v35 = vpop.xlane.xlu0 %1407 }
 0x2a4   : > { %v1490_v18 = vsub.f32 %v3530_v36, %v1408_v35  ;;  %v1430_v36 = vsel %vm1387_vm2, %v3604_v42, -inf }
 0x2a6   : > { %v3598_v26 = vpop.eup %2932  ;;  %v1528_v17 = vmul.f32 1.442695, %v1490_v18 }
 0x2a7   : > { %v1595_v38 = vsel %vm1387_vm2, %v3598_v26, 0.0 }
 0x2a8   : > { %2934 = vpow2.f32 %v1528_v17  ;;  %1596 = vadd.xlane.f32.xlu2 %v1595_v38  ;;  %1428 = vmax.xlane.f32.xlu1 %v1427_v39  ;;  %v1325_v39 = vpop.f32.mrf.mxu2 }
 0x2ab   : > { %v1411_v43 = vpop.xlane.xlu1 %1410 }
 0x2ac   : > { %v1491_v44 = vsub.f32 %v3535_v37, %v1411_v43  ;;  %v1433_v37 = vsel %vm1387_vm2, %v3613_v48, -inf  ;;  %v3657_v43 = vmul.f32 0.25, %v1322_v29 }
 0x2ae   : > { %v3609_v45 = vpop.eup %2934  ;;  %v1530_v46 = vmul.f32 1.442695, %v1491_v44 }
 0x2af   : > { %v1598_v47 = vsel %vm1387_vm2, %v3609_v45, 0.0 }
 0x2b0   : > { %2936 = vpow2.f32 %v1530_v46  ;;  %1599 = vadd.xlane.f32.xlu2 %v1598_v47  ;;  %1431 = vmax.xlane.f32.xlu1 %v1430_v36 }
 0x2b3   : > { %v1414_v50 = vpop.xlane.xlu1 %1413 }
 0x2b4   : > { %v1492_v52 = vsub.f32 %v3539_v40, %v1414_v50 }
 0x2b6   : > { %v3618_v53 = vpop.eup %2936  ;;  %v1532_v24 = vmul.f32 1.442695, %v1492_v52 }
 0x2b7   : > { %v1601_v27 = vsel %vm1387_vm2, %v3618_v53, 0.0 }
 0x2b8   : > { %2938 = vpow2.f32 %v1532_v24  ;;  %1602 = vadd.xlane.f32.xlu0 %v1601_v27  ;;  %1434 = vmax.xlane.f32.xlu2 %v1433_v37  ;;  %v1327_v24 = vpop.f32.mrf.mxu2 }
 0x2b9   : > { %v3678_v51 = vmul.f32 0.25, %v1327_v24 }
 0x2be   : > { %v3626_v58 = vpop.eup %2938 }
 0x2bf   : > { %v1604_v40 = vsel %vm1387_vm2, %v3626_v58, 0.0 }
 0x2c0   : > { %1605 = vadd.xlane.f32.xlu0 %v1604_v40  ;;  %1437 = vmax.xlane.f32.xlu2 %v1436_v56 }
 0x2c8   : > { %1440 = vmax.xlane.f32.xlu0 %v1439_v34 }
 0x2d0   : > { %1443 = vmax.xlane.f32.xlu0 %v1442_v20 }
 0x2f3   : > { %v1582_v6 = vpop.xlane.xlu2 %1581 }
 0x2f4   : > { %2940 = vrcp.f32 %v1582_v6 }
 0x2fa   : > { %v2941_v12 = vpop.eup %2940 }
 0x2fb   : > { %v1585_v0 = vpop.xlane.xlu0 %1584  ;;  %v1417_v9 = vpop.xlane.xlu2 %1416  ;;  %v1708_v19 = vmul.f32 %v2941_v12, %v3555_v59 }
 0x2fc   : > { %2942 = vrcp.f32 %v1585_v0  ;;  %v1493_v10 = vsub.f32 %v3559_v57, %v1417_v9  ;;  %v1330_v9 = vpop.f32.mrf.mxu2 }
 0x2fe   : > { %v1534_v14 = vmul.f32 1.442695, %v1493_v10 }
 0x300   : > { %2944 = vpow2.f32 %v1534_v14 }
 0x302   : > { %v2943_v3 = vpop.eup %2942 }
 0x303   : > { %v1709_v15 = vmul.f32 %v2943_v3, %v3562_v62  ;;  %v1588_v21 = vpop.xlane.xlu0 %1587  ;;  %v1420_v22 = vpop.xlane.xlu2 %1419 }
 0x304   : > { %v1494_v16 = vsub.f32 %v3568_v1, %v1420_v22 }
 0x305   : > { %v1740_v25 = vpack.c.bf16 %v1709_v15, %v1708_v19 }
 0x306   : > { %v3646_v4 = vpop.eup %2944  ;;  %v1536_v28 = vmul.f32 1.442695, %v1494_v16 }
 0x307   : > { %2734 = vmatmul.msk.bf16.vlgmr.msrb.gmra.mxu3 %vm1387_vm2, %v1740_v25  ;;  %v1607_v57 = vsel %vm1387_vm2, %v3646_v4, 0.0  ;;  %v1335_v25 = vpop.f32.mrf.mxu3 }
 0x308   : > { %2946 = vpow2.f32 %v1536_v28  ;;  %1608 = vadd.xlane.f32.xlu1 %v1607_v57  ;;  %v1332_v28 = vpop.f32.mrf.mxu2 }
 0x309   : > { %2948 = vrcp.f32 %v1588_v21 }
 0x30b   : > { %v1591_v59 = vpop.xlane.xlu1 %1590  ;;  %v1423_v30 = vpop.xlane.xlu0 %1422 }
 0x30c   : > { %2950 = vrcp.f32 %v1591_v59  ;;  %v1495_v62 = vsub.f32 %v3577_v11, %v1423_v30  ;;  %v3699_v59 = vmul.f32 0.25, %v1332_v28 }
 0x30e   : > { %v3652_v35 = vpop.eup %2946  ;;  %v1538_v1 = vmul.f32 1.442695, %v1495_v62 }
 0x30f   : > { %v1610_v18 = vsel %vm1387_vm2, %v3652_v35, 0.0  ;;  %v2949_v17 = vpop.eup %2948 }
 0x310   : > { %2952 = vpow2.f32 %v1538_v1  ;;  %1611 = vadd.xlane.f32.xlu1 %v1610_v18  ;;  %v1710_v41 = vmul.f32 %v2949_v17, %v3571_v7  ;;  %v1445_v7 = vsel %vm1387_vm2, %v3657_v43, -inf }
 0x312   : > { %v2951_v38 = vpop.eup %2950 }
 0x313   : > { %v1711_v44 = vmul.f32 %v2951_v38, %v3580_v13  ;;  %v1594_v36 = vpop.xlane.xlu1 %1593  ;;  %v1426_v46 = vpop.xlane.xlu0 %1425  ;;  %v3668_v13 = vmul.f32 0.25, %v1325_v39 }
 0x314   : > { %v1496_v11 = vsub.f32 %v3586_v23, %v1426_v46 }
 0x315   : > { %v1741_v47 = vpack.c.bf16 %v1711_v44, %v1710_v41  ;;  %v1448_v34 = vsel %vm1387_vm2, %v3668_v13, -inf  ;;  %v1337_v41 = vpop.f32.mrf.mxu3 }
 0x316   : > { %v3661_v49 = vpop.eup %2952  ;;  %v1540_v50 = vmul.f32 1.442695, %v1496_v11 }
 0x317   : > { %2735 = vmatmul.msk.bf16.gmra.mxu3 %vm1387_vm2, %v1741_v47  ;;  %v1613_v52 = vsel %vm1387_vm2, %v3661_v49, 0.0 }
 0x318   : > { %2954 = vpow2.f32 %v1540_v50  ;;  %1614 = vadd.xlane.f32.xlu2 %v1613_v52  ;;  %1446 = vmax.xlane.f32.xlu1 %v1445_v7  ;;  %v3719_v50 = vmul.f32 0.25, %v1337_v41 }
 0x319   : > { %2956 = vrcp.f32 %v1594_v36 }
 0x31b   : > { %v1597_v37 = vpop.xlane.xlu2 %1596  ;;  %v1429_v23 = vpop.xlane.xlu1 %1428 }
 0x31c   : > { %2958 = vrcp.f32 %v1597_v37  ;;  %v1497_v27 = vsub.f32 %v3595_v32, %v1429_v23 }
 0x31d   : > { %v1340_v7 = vpop.f32.mrf.mxu3 }
 0x31e   : > { %v3671_v55 = vpop.eup %2954  ;;  %v1542_v56 = vmul.f32 1.442695, %v1497_v27 }
 0x31f   : > { %v1616_v40 = vsel %vm1387_vm2, %v3671_v55, 0.0  ;;  %v2957_v33 = vpop.eup %2956 }
 0x320   : > { %2960 = vpow2.f32 %v1542_v56  ;;  %1617 = vadd.xlane.f32.xlu2 %v1616_v40  ;;  %1449 = vmax.xlane.f32.xlu1 %v1448_v34  ;;  %v1712_v61 = vmul.f32 %v2957_v33, %v3589_v8  ;;  %v1451_v8 = vsel %vm1387_vm2, %v3678_v51, -inf  ;;  %v3728_v56 = vmul.f32 0.25, %v1340_v7 }
 0x322   : > { %v2959_v20 = vpop.eup %2958 }
 0x323   : > { %v1713_v32 = vmul.f32 %v2959_v20, %v3598_v26  ;;  %v1600_v63 = vpop.xlane.xlu2 %1599  ;;  %v1432_v2 = vpop.xlane.xlu1 %1431  ;;  %v3689_v26 = vmul.f32 0.25, %v1330_v9 }
 0x324   : > { %v1498_v5 = vsub.f32 %v3604_v42, %v1432_v2 }
 0x325   : > { %v1742_v6 = vpack.c.bf16 %v1713_v32, %v1712_v61  ;;  %v1454_v22 = vsel %vm1387_vm2, %v3689_v26, -inf  ;;  %v1342_v34 = vpop.f32.mrf.mxu3 }
 0x326   : > { %v3682_v0 = vpop.eup %2960  ;;  %v1544_v10 = vmul.f32 1.442695, %v1498_v5  ;;  %v3736_v20 = vmul.f32 0.25, %v1342_v34 }
 0x327   : > { %2736 = vmatmul.msk.bf16.gmra.mxu3 %vm1387_vm2, %v1742_v6  ;;  %v1619_v14 = vsel %vm1387_vm2, %v3682_v0, 0.0  ;;  %v2848_v6 = vld [vmem:[%s4104_s12] sm:$0xff] }
 0x328   : > { %2962 = vpow2.f32 %v1544_v10  ;;  %1620 = vadd.xlane.f32.xlu0 %v1619_v14  ;;  %1452 = vmax.xlane.f32.xlu2 %v1451_v8  ;;  %v1469_v61 = vsel %vm1387_vm2, %v3736_v20, -inf }
 0x329   : > { %2964 = vrcp.f32 %v1600_v63  ;;  %1981 = vmatpush.bf16.msrb.mxu1 %v2848_v6 }
 0x32b   : > { %v1603_v42 = vpop.xlane.xlu0 %1602  ;;  %v1435_v12 = vpop.xlane.xlu2 %1434 }
 0x32c   : > { %2966 = vrcp.f32 %v1603_v42  ;;  %v1499_v3 = vsub.f32 %v3613_v48, %v1435_v12 }
 0x32d   : > { %v1345_v32 = vpop.f32.mrf.mxu3 }
 0x32e   : > { %v3692_v19 = vpop.eup %2962  ;;  %v1546_v15 = vmul.f32 1.442695, %v1499_v3  ;;  %v3740_v63 = vmul.f32 0.25, %v1345_v32 }
 0x32f   : > { %v1622_v21 = vsel %vm1387_vm2, %v3692_v19, 0.0  ;;  %v2965_v16 = vpop.eup %2964 }
 0x330   : > { %2968 = vpow2.f32 %v1546_v15  ;;  %1623 = vadd.xlane.f32.xlu0 %v1622_v21  ;;  %1455 = vmax.xlane.f32.xlu2 %v1454_v22  ;;  %v1714_v29 = vmul.f32 %v2965_v16, %v3609_v45  ;;  %v1457_v45 = vsel %vm1387_vm2, %v3699_v59, -inf  ;;  %v1472_v2 = vsel %vm1387_vm2, %v3740_v63, -inf }
 0x332   : > { %v2967_v57 = vpop.eup %2966 }
 0x333   : > { %v1715_v48 = vmul.f32 %v2967_v57, %v3618_v53  ;;  %v1606_v30 = vpop.xlane.xlu0 %1605  ;;  %v1438_v62 = vpop.xlane.xlu2 %1437  ;;  %v3710_v53 = vmul.f32 0.25, %v1335_v25 }
 0x334   : > { %v1500_v1 = vsub.f32 %v3622_v54, %v1438_v62 }
 0x335   : > { %v1743_v18 = vpack.c.bf16 %v1715_v48, %v1714_v29  ;;  %v1460_v36 = vsel %vm1387_vm2, %v3710_v53, -inf  ;;  %v1347_v5 = vpop.f32.mrf.mxu3 }
 0x336   : > { %v3703_v17 = vpop.eup %2968  ;;  %v1548_v38 = vmul.f32 1.442695, %v1500_v1 }
 0x337   : > { %2737 = vmatmul.msk.bf16.gmra.mxu3 %vm1387_vm2, %v1743_v18  ;;  %v1625_v39 = vsel %vm1387_vm2, %v3703_v17, 0.0 }
 0x338   : > { %2970 = vpow2.f32 %v1548_v38  ;;  %1626 = vadd.xlane.f32.xlu1 %v1625_v39  ;;  %1458 = vmax.xlane.f32.xlu0 %v1457_v45 }
 0x33b   : > { %v1441_v44 = vpop.xlane.xlu0 %1440 }
 0x33c   : > { %v1501_v54 = vsub.f32 %v3630_v31, %v1441_v44  ;;  %v1463_v31 = vsel %vm1387_vm2, %v3719_v50, -inf }
 0x33d   : > { %v3747_v9 = vpop.f32.mrf.mxu3 }
 0x33e   : > { %v3715_v46 = vpop.eup %2970  ;;  %v1550_v11 = vmul.f32 1.442695, %v1501_v54 }
 0x33f   : > { %v1628_v47 = vsel %vm1387_vm2, %v3715_v46, 0.0 }
 0x340   : > { %2972 = vpow2.f32 %v1550_v11  ;;  %1629 = vadd.xlane.f32.xlu1 %v1628_v47  ;;  %1461 = vmax.xlane.f32.xlu0 %v1460_v36 }
 0x343   : > { %v1444_v52 = vpop.xlane.xlu0 %1443 }
 0x344   : > { %v1502_v37 = vsub.f32 %v3634_v60, %v1444_v52  ;;  %v1466_v60 = vsel %vm1387_vm2, %v3728_v56, -inf }
 0x345   : > { %v3749_v42 = vpop.f32.mrf.mxu3 }
 0x346   : > { %v3724_v23 = vpop.eup %2972  ;;  %v1552_v24 = vmul.f32 1.442695, %v1502_v37  ;;  %v3769_v37 = vmul.f32 0.25, %v1347_v5 }
 0x347   : > { %v1631_v27 = vsel %vm1387_vm2, %v3724_v23, 0.0 }
 0x348   : > { %2974 = vpow2.f32 %v1552_v24  ;;  %1464 = vmax.xlane.f32.xlu1 %v1463_v31  ;;  %1632 = vadd.xlane.f32.xlu2 %v1631_v27 }
 0x349   : > { %2976 = vrcp.f32 %v1606_v30 }
 0x34e   : > { %v3730_v40 = vpop.eup %2974 }
 0x34f   : > { %v1634_v33 = vsel %vm1387_vm2, %v3730_v40, 0.0  ;;  %v2977_v14 = vpop.eup %2976 }
 0x350   : > { %1467 = vmax.xlane.f32.xlu1 %v1466_v60  ;;  %1635 = vadd.xlane.f32.xlu2 %v1634_v33  ;;  %v1716_v12 = vmul.f32 %v2977_v14, %v3626_v58 }
 0x358   : > { %1470 = vmax.xlane.f32.xlu2 %v1469_v61 }
 0x360   : > { %1473 = vmax.xlane.f32.xlu2 %v1472_v2 }
 0x37b   : > { %v1609_v10 = vpop.xlane.xlu1 %1608 }
 0x37c   : > { %2978 = vrcp.f32 %v1609_v10 }
 0x382   : > { %v2979_v8 = vpop.eup %2978 }
 0x383   : > { %v1717_v3 = vmul.f32 %v2979_v8, %v3646_v4  ;;  %v1612_v15 = vpop.xlane.xlu1 %1611 }
 0x384   : > { %2980 = vrcp.f32 %v1612_v15 }
 0x385   : > { %v1744_v21 = vpack.c.bf16 %v1717_v3, %v1716_v12 }
 0x387   : > { %2738 = vmatmul.msk.bf16.gmra.mxu3 %vm1387_vm2, %v1744_v21 }
 0x38a   : > { %v1818_v22 = vpop.f32.mrf.mxu3  ;;  %v2981_v29 = vpop.eup %2980 }
 0x38b   : > { %v1615_v16 = vpop.xlane.xlu2 %1614  ;;  %v1447_v25 = vpop.xlane.xlu1 %1446  ;;  %v1718_v58 = vmul.f32 %v2981_v29, %v3652_v35 }
 0x38c   : > { %2982 = vrcp.f32 %v1615_v16  ;;  %v1503_v28 = vsub.f32 %v3657_v43, %v1447_v25 }
 0x38e   : > { %v1554_v57 = vmul.f32 1.442695, %v1503_v28 }
 0x390   : > { %2984 = vpow2.f32 %v1554_v57 }
 0x392   : > { %v2983_v48 = vpop.eup %2982  ;;  %v1820_v30 = vpop.f32.mrf.mxu3 }
 0x393   : > { %v1719_v4 = vmul.f32 %v2983_v48, %v3661_v49  ;;  %v1898_v62 = vpack.c.bf16 %v1820_v30, %v1818_v22  ;;  %v1618_v1 = vpop.xlane.xlu2 %1617  ;;  %v1450_v18 = vpop.xlane.xlu1 %1449  ;;  %v3793_v22 = vmul.f32 0.25, %v3749_v42 }
 0x394   : > { %v1504_v38 = vsub.f32 %v3668_v13, %v1450_v18 }
 0x395   : > { %2754 = vmatmul.msk.bf16.vlgmr.msrb.gmra.mxu1 %vm927_vm1, %v1898_v62  ;;  %v1745_v39 = vpack.c.bf16 %v1719_v4, %v1718_v58  ;;  %v1481_v42 = vsel %vm1387_vm2, %v3793_v22, -inf }
 0x396   : > { %v3759_v45 = vpop.eup %2984  ;;  %v1556_v43 = vmul.f32 1.442695, %v1504_v38 }
 0x397   : > { %2739 = vmatmul.msk.bf16.gmra.mxu3 %vm1387_vm2, %v1745_v39  ;;  %v1637_v41 = vsel %vm1387_vm2, %v3759_v45, 0.0 }
 0x398   : > { %2986 = vpow2.f32 %v1556_v43  ;;  %1638 = vadd.xlane.f32.xlu0 %v1637_v41 }
 0x399   : > { %2988 = vrcp.f32 %v1618_v1 }
 0x39a   : > { %v1823_v35 = vpop.f32.mrf.mxu3 }
 0x39b   : > { %v1621_v49 = vpop.xlane.xlu0 %1620  ;;  %v1453_v44 = vpop.xlane.xlu2 %1452 }
 0x39c   : > { %2990 = vrcp.f32 %v1621_v49  ;;  %v1505_v13 = vsub.f32 %v3678_v51, %v1453_v44 }
 0x39e   : > { %v3765_v54 = vpop.eup %2986  ;;  %v1558_v36 = vmul.f32 1.442695, %v1505_v13 }
 0x39f   : > { %v1640_v11 = vsel %vm1387_vm2, %v3765_v54, 0.0  ;;  %v2989_v47 = vpop.eup %2988 }
 0x3a0   : > { %2992 = vpow2.f32 %v1558_v36  ;;  %1641 = vadd.xlane.f32.xlu0 %v1640_v11  ;;  %v1720_v31 = vmul.f32 %v2989_v47, %v3671_v55  ;;  %v1475_v55 = vsel %vm1387_vm2, %v3769_v37, -inf }
 0x3a2   : > { %v2991_v52 = vpop.eup %2990  ;;  %v1825_v7 = vpop.f32.mrf.mxu3 }
 0x3a3   : > { %v1721_v24 = vmul.f32 %v2991_v52, %v3682_v0  ;;  %v1899_v27 = vpack.c.bf16 %v1825_v7, %v1823_v35  ;;  %v1624_v34 = vpop.xlane.xlu0 %1623  ;;  %v1456_v51 = vpop.xlane.xlu2 %1455 }
 0x3a4   : > { %v1506_v60 = vsub.f32 %v3689_v26, %v1456_v51  ;;  %v3783_v26 = vmul.f32 0.25, %v3747_v9 }
 0x3a5   : > { %2755 = vmatmul.msk.bf16.gmra.mxu1 %vm927_vm1, %v1899_v27  ;;  %v1746_v33 = vpack.c.bf16 %v1721_v24, %v1720_v31 }
 0x3a6   : > { %v3775_v61 = vpop.eup %2992  ;;  %v1560_v32 = vmul.f32 1.442695, %v1506_v60  ;;  %v1478_v3 = vsel %vm1387_vm2, %v3783_v26, -inf }
 0x3a7   : > { %2740 = vmatmul.msk.bf16.gmra.mxu3 %vm1387_vm2, %v1746_v33  ;;  %v1643_v2 = vsel %vm1387_vm2, %v3775_v61, 0.0 }
 0x3a8   : > { %2994 = vpow2.f32 %v1560_v32  ;;  %1644 = vadd.xlane.f32.xlu1 %v1643_v2  ;;  %1476 = vmax.xlane.f32.xlu0 %v1475_v55  ;;  %v2850_v2 = vld [vmem:[%s4106_s14 + $0x8] sm:$0xff] }
 0x3a9   : > { %2996 = vrcp.f32 %v1624_v34  ;;  %2286 = vmatpush.bf16.msra.mxu2 %v2850_v2  ;;  %v2852_v55 = vld [vmem:[%s4107_s15 + $0x8] sm:$0xff] }
 0x3aa   : > { %v1828_v0 = vpop.f32.mrf.mxu3  ;;  %2137 = vmatpush.bf16.msrb.mxu0 %v2852_v55 }
 0x3ab   : > { %v1627_v5 = vpop.xlane.xlu1 %1626  ;;  %v1459_v6 = vpop.xlane.xlu0 %1458 }
 0x3ac   : > { %2998 = vrcp.f32 %v1627_v5  ;;  %v1507_v10 = vsub.f32 %v3699_v59, %v1459_v6  ;;  %v3050_v5 = vld [vmem:[%s3304_s26] sm:$0xff] }
 0x3ae   : > { %v3786_v14 = vpop.eup %2994  ;;  %v1562_v8 = vmul.f32 1.442695, %v1507_v10 }
 0x3af   : > { %v1646_v12 = vsel %vm1387_vm2, %v3786_v14, 0.0  ;;  %v2997_v15 = vpop.eup %2996 }
 0x3b0   : > { %3000 = vpow2.f32 %v1562_v8  ;;  %1647 = vadd.xlane.f32.xlu1 %v1646_v12  ;;  %1479 = vmax.xlane.f32.xlu0 %v1478_v3  ;;  %v1722_v59 = vmul.f32 %v2997_v15, %v3692_v19 }
 0x3b2   : > { %v2999_v9 = vpop.eup %2998  ;;  %v1830_v21 = vpop.f32.mrf.mxu3 }
 0x3b3   : > { %v1723_v16 = vmul.f32 %v2999_v9, %v3703_v17  ;;  %v1900_v25 = vpack.c.bf16 %v1830_v21, %v1828_v0  ;;  %v1630_v28 = vpop.xlane.xlu1 %1629  ;;  %v1462_v57 = vpop.xlane.xlu0 %1461  ;;  %v2851_v0 = vld [vmem:[%s4107_s15] sm:$0xff] }
 0x3b4   : > { %v1508_v29 = vsub.f32 %v3710_v53, %v1462_v57  ;;  %2138 = vmatpush.bf16.msrb.mxu0 %v2851_v0  ;;  %v3051_v57 = vld [vmem:[%s3304_s26 + $0x8] sm:$0xff] }
 0x3b5   : > { %2756 = vmatmul.msk.bf16.gmra.mxu1 %vm927_vm1, %v1900_v25  ;;  %v1747_v48 = vpack.c.bf16 %v1723_v16, %v1722_v59  ;;  %v3853_v25 = vld [vmem:[%s4105_s13] ss:$0 sm:$0xff] }
 0x3b6   : > { %v3799_v30 = vpop.eup %3000  ;;  %v1564_v58 = vmul.f32 1.442695, %v1508_v29 }
 0x3b7   : > { %2741 = vmatmul.msk.bf16.gmra.mxu3 %vm1387_vm2, %v1747_v48  ;;  %v1649_v19 = vsel %vm1387_vm2, %v3799_v30, 0.0  ;;  %2778 = vmatmul.msk.bf16.vlgmr.msrb.gmra.mxu0 %vm729_vm0, %v3050_v5 }
 0x3b8   : > { %3002 = vpow2.f32 %v1564_v58  ;;  %1482 = vmax.xlane.f32.xlu1 %v1481_v42  ;;  %1650 = vadd.xlane.f32.xlu2 %v1649_v19 }
 0x3b9   : > { %3004 = vrcp.f32 %v1630_v28 }
 0x3ba   : > { %v1833_v17 = vpop.f32.mrf.mxu3 }
 0x3bb   : > { %v1465_v53 = vpop.xlane.xlu1 %1464  ;;  %v1633_v4 = vpop.xlane.xlu2 %1632 }
 0x3bc   : > { %v1509_v62 = vsub.f32 %v3719_v50, %v1465_v53  ;;  %3006 = vrcp.f32 %v1633_v4 }
 0x3be   : > { %v3807_v1 = vpop.eup %3002  ;;  %v1566_v18 = vmul.f32 1.442695, %v1509_v62 }
 0x3bf   : > { %v1652_v38 = vsel %vm1387_vm2, %v3807_v1, 0.0  ;;  %v3005_v39 = vpop.eup %3004 }
 0x3c0   : > { %3008 = vpow2.f32 %v1566_v18  ;;  %1653 = vadd.xlane.f32.xlu2 %v1652_v38  ;;  %v1724_v35 = vmul.f32 %v3005_v39, %v3715_v46 }
 0x3c2   : > { %v3007_v43 = vpop.eup %3006  ;;  %v1835_v41 = vpop.f32.mrf.mxu3 }
 0x3c3   : > { %v1725_v49 = vmul.f32 %v3007_v43, %v3724_v23  ;;  %v1901_v44 = vpack.c.bf16 %v1835_v41, %v1833_v17  ;;  %v1468_v13 = vpop.xlane.xlu1 %1467  ;;  %v1636_v36 = vpop.xlane.xlu2 %1635 }
 0x3c4   : > { %v1510_v50 = vsub.f32 %v3728_v56, %v1468_v13 }
 0x3c5   : > { %2757 = vmatmul.msk.bf16.gmra.mxu1 %vm927_vm1, %v1901_v44  ;;  %v1748_v11 = vpack.c.bf16 %v1725_v49, %v1724_v35 }
 0x3c6   : > { %v3815_v47 = vpop.eup %3008  ;;  %v1568_v52 = vmul.f32 1.442695, %v1510_v50 }
 0x3c7   : > { %2742 = vmatmul.msk.bf16.gmra.mxu3 %vm1387_vm2, %v1748_v11  ;;  %v1655_v7 = vsel %vm1387_vm2, %v3815_v47, 0.0  ;;  %2779 = vmatmul.msk.bf16.gmra.mxu0 %vm729_vm0, %v3051_v57 }
 0x3c8   : > { %3010 = vpow2.f32 %v1568_v52  ;;  %1656 = vadd.xlane.f32.xlu0 %v1655_v7  ;;  %v3052_v7 = vld [vmem:[%s3304_s26 + $0x10] sm:$0xff] }
 0x3cb   : > { %v1471_v46 = vpop.xlane.xlu2 %1470 }
 0x3cc   : > { %v1511_v23 = vsub.f32 %v3736_v20, %v1471_v46 }
 0x3ce   : > { %v3821_v31 = vpop.eup %3010  ;;  %v1570_v24 = vmul.f32 1.442695, %v1511_v23 }
 0x3cf   : > { %v1658_v56 = vsel %vm1387_vm2, %v3821_v31, 0.0 }
 0x3d0   : > { %3012 = vpow2.f32 %v1570_v24  ;;  %1659 = vadd.xlane.f32.xlu1 %v1658_v56 }
 0x3d3   : > { %v1474_v27 = vpop.xlane.xlu2 %1473 }
 0x3d4   : > { %v1512_v34 = vsub.f32 %v3740_v63, %v1474_v27  ;;  %v2849_v63 = vld [vmem:[%s4106_s14] sm:$0xff] }
 0x3d5   : > { %2287 = vmatpush.bf16.msra.mxu2 %v2849_v63 }
 0x3d6   : > { %v3826_v51 = vpop.eup %3012  ;;  %v1572_v60 = vmul.f32 1.442695, %v1512_v34 }
 0x3d7   : > { %v1661_v33 = vsel %vm1387_vm2, %v3826_v51, 0.0  ;;  %2780 = vmatmul.msk.bf16.gmra.mxu0 %vm729_vm0, %v3052_v7  ;;  %v3055_v7 = vld [vmem:[%s3304_s26 + $0x28] sm:$0xff] }
 0x3d8   : > { %3014 = vpow2.f32 %v1572_v60  ;;  %1662 = vadd.xlane.f32.xlu2 %v1661_v33 }
 0x3d9   : > { %3016 = vrcp.f32 %v1636_v36 }
 0x3de   : > { %v3830_v20 = vpop.eup %3014 }
 0x3df   : > { %v1664_v32 = vsel %vm1387_vm2, %v3830_v20, 0.0  ;;  %v3017_v8 = vpop.eup %3016 }
 0x3e0   : > { %1665 = vadd.xlane.f32.xlu0 %v1664_v32  ;;  %v1726_v9 = vmul.f32 %v3017_v8, %v3730_v40 }
 0x40a   : > { %v1838_v6 = vpop.f32.mrf.mxu3 }
 0x40b   : > { %v1639_v10 = vpop.xlane.xlu0 %1638 }
 0x40c   : > { %3018 = vrcp.f32 %v1639_v10 }
 0x412   : > { %v3019_v12 = vpop.eup %3018  ;;  %v1840_v3 = vpop.f32.mrf.mxu3 }
 0x413   : > { %v1983_v15 = vpop.f32.mrf.mxu1  ;;  %v1727_v21 = vmul.f32 %v3019_v12, %v3759_v45  ;;  %v1902_v59 = vpack.c.bf16 %v1840_v3, %v1838_v6  ;;  %v1642_v16 = vpop.xlane.xlu0 %1641 }
 0x414   : > { %v1984_v29 = vadd.f32 %v3853_v25, %v1983_v15  ;;  %3020 = vrcp.f32 %v1642_v16 }
 0x415   : > { %2758 = vmatmul.msk.bf16.gmra.mxu1 %vm927_vm1, %v1902_v59  ;;  %v1749_v28 = vpack.c.bf16 %v1727_v21, %v1726_v9  ;;  %v3053_v9 = vld [vmem:[%s3304_s26 + $0x18] sm:$0xff] }
 0x416   : > { %v2063_v17 = vmax.f32 %v1984_v29, 0.0  ;;  %2781 = vmatmul.msk.bf16.gmra.mxu0 %vm729_vm0, %v3053_v9 }
 0x417   : > { %2743 = vmatmul.msk.bf16.gmra.mxu3 %vm1387_vm2, %v1749_v28 }
 0x41a   : > { %v1843_v40 = vpop.f32.mrf.mxu3  ;;  %v3021_v18 = vpop.eup %3020 }
 0x41b   : > { %v1985_v45 = vpop.f32.mrf.mxu1  ;;  %v1645_v58 = vpop.xlane.xlu1 %1644  ;;  %v1728_v41 = vmul.f32 %v3021_v18, %v3765_v54 }
 0x41c   : > { %v1986_v48 = vadd.f32 %v3853_v25, %v1985_v45  ;;  %v1477_v42 = vpop.xlane.xlu0 %1476  ;;  %3022 = vrcp.f32 %v1645_v58 }
 0x41d   : > { %v1513_v19 = vsub.f32 %v3769_v37, %v1477_v42 }
 0x41e   : > { %v2064_v53 = vmax.f32 %v1986_v48, 0.0 }
 0x41f   : > { %v1574_v4 = vmul.f32 1.442695, %v1513_v19 }
 0x420   : > { %v2095_v62 = vpack.c.bf16 %v2064_v53, %v2063_v17 }
 0x421   : > { %3024 = vpow2.f32 %v1574_v4 }
 0x422   : > { %2802 = vmatmul.msk.bf16.vlgmr.msra.gmra.mxu2 %vm729_vm0, %v2095_v62  ;;  %v3023_v38 = vpop.eup %3022  ;;  %v1845_v39 = vpop.f32.mrf.mxu3  ;;  %v3054_v62 = vld [vmem:[%s3304_s26 + $0x20] sm:$0xff] }
 0x423   : > { %v1988_v43 = vpop.f32.mrf.mxu1  ;;  %v1729_v35 = vmul.f32 %v3023_v38, %v3775_v61  ;;  %v1903_v49 = vpack.c.bf16 %v1845_v39, %v1843_v40  ;;  %v1648_v44 = vpop.xlane.xlu1 %1647 }
 0x424   : > { %v1480_v13 = vpop.xlane.xlu0 %1479  ;;  %v1989_v54 = vadd.f32 %v3853_v25, %v1988_v43 }
 0x425   : > { %v1514_v37 = vsub.f32 %v3783_v26, %v1480_v13  ;;  %2759 = vmatmul.msk.bf16.gmra.mxu1 %vm927_vm1, %v1903_v49  ;;  %v1750_v36 = vpack.c.bf16 %v1729_v35, %v1728_v41 }
 0x426   : > { %v2065_v27 = vmax.f32 %v1989_v54, 0.0  ;;  %2782 = vmatmul.msk.bf16.gmra.mxu0 %vm729_vm0, %v3054_v62  ;;  %v3056_v54 = vld [vmem:[%s3304_s26 + $0x30] sm:$0xff] }
 0x427   : > { %v3867_v50 = vpop.eup %3024  ;;  %v1576_v11 = vmul.f32 1.442695, %v1514_v37  ;;  %2744 = vmatmul.msk.bf16.gmra.mxu3 %vm1387_vm2, %v1750_v36 }
 0x428   : > { %v1667_v52 = vsel %vm1387_vm2, %v3867_v50, 0.0 }
 0x429   : > { %3026 = vpow2.f32 %v1576_v11  ;;  %1668 = vadd.xlane.f32.xlu1 %v1667_v52 }
 0x42a   : > { %3028 = vrcp.f32 %v1648_v44  ;;  %v1848_v61 = vpop.f32.mrf.mxu3 }
 0x42b   : > { %v1990_v26 = vpop.f32.mrf.mxu1  ;;  %v1483_v23 = vpop.xlane.xlu1 %1482 }
 0x42c   : > { %v1991_v46 = vadd.f32 %v3853_v25, %v1990_v26  ;;  %v1651_v24 = vpop.xlane.xlu2 %1650  ;;  %v1515_v56 = vsub.f32 %v3793_v22, %v1483_v23  ;;  %v3058_v26 = vld [vmem:[%s3304_s26 + $0x40] sm:$0xff]  ;;  %v3059_v23 = vld [vmem:[%s3304_s26 + $0x48] sm:$0xff] }
 0x42d   : > { %3030 = vrcp.f32 %v1651_v24 }
 0x42e   : > { %v2066_v34 = vmax.f32 %v1991_v46, 0.0  ;;  %v1578_v33 = vmul.f32 1.442695, %v1515_v56 }
 0x42f   : > { %v3877_v60 = vpop.eup %3026 }
 0x430   : > { %v2096_v32 = vpack.c.bf16 %v2066_v34, %v2065_v27  ;;  %v1670_v2 = vsel %vm1387_vm2, %v3877_v60, 0.0  ;;  %v3029_v63 = vpop.eup %3028  ;;  %3032 = vpow2.f32 %v1578_v33 }
 0x431   : > { %1671 = vadd.xlane.f32.xlu2 %v1670_v2  ;;  %v1730_v22 = vmul.f32 %v3029_v63, %v3786_v14 }
 0x432   : > { %2803 = vmatmul.msk.bf16.gmra.mxu2 %vm729_vm0, %v2096_v32  ;;  %v1850_v0 = vpop.f32.mrf.mxu3 }
 0x433   : > { %v3031_v55 = vpop.eup %3030  ;;  %v1993_v5 = vpop.f32.mrf.mxu1  ;;  %v1904_v10 = vpack.c.bf16 %v1850_v0, %v1848_v61  ;;  %v3057_v61 = vld [vmem:[%s3304_s26 + $0x38] sm:$0xff] }
 0x434   : > { %v1731_v6 = vmul.f32 %v3031_v55, %v3799_v30  ;;  %v1654_v3 = vpop.xlane.xlu2 %1653  ;;  %v1994_v14 = vadd.f32 %v3853_v25, %v1993_v5 }
 0x435   : > { %2760 = vmatmul.msk.bf16.gmra.mxu1 %vm927_vm1, %v1904_v10  ;;  %3034 = vrcp.f32 %v1654_v3 }
 0x436   : > { %v1751_v8 = vpack.c.bf16 %v1731_v6, %v1730_v22  ;;  %v3885_v12 = vpop.eup %3032  ;;  %v2067_v28 = vmax.f32 %v1994_v14, 0.0  ;;  %2783 = vmatmul.msk.bf16.gmra.mxu0 %vm729_vm0, %v3055_v7 }
 0x437   : > { %v1673_v15 = vsel %vm1387_vm2, %v3885_v12, 0.0 }
 0x438   : > { %2745 = vmatmul.msk.bf16.gmra.mxu3 %vm1387_vm2, %v1751_v8  ;;  %1674 = vadd.xlane.f32.xlu0 %v1673_v15  ;;  %v3927_v15 = vld [vmem:[%s4108_s16] ss:$0 sm:$0xff] }
 0x43a   : > { %v1853_v30 = vpop.f32.mrf.mxu3 }
 0x43b   : > { %v1995_v21 = vpop.f32.mrf.mxu1  ;;  %v1657_v16 = vpop.xlane.xlu0 %1656 }
 0x43c   : > { %v1996_v59 = vadd.f32 %v3853_v25, %v1995_v21  ;;  %3036 = vrcp.f32 %v1657_v16  ;;  %v3035_v40 = vpop.eup %3034 }
 0x43d   : > { %v1732_v42 = vmul.f32 %v3035_v40, %v3807_v1 }
 0x43e   : > { %v2068_v57 = vmax.f32 %v1996_v59, 0.0 }
 0x440   : > { %v2097_v29 = vpack.c.bf16 %v2068_v57, %v2067_v28 }
 0x442   : > { %2804 = vmatmul.msk.bf16.gmra.mxu2 %vm729_vm0, %v2097_v29  ;;  %v3037_v45 = vpop.eup %3036  ;;  %v1855_v48 = vpop.f32.mrf.mxu3 }
 0x443   : > { %v1998_v58 = vpop.f32.mrf.mxu1  ;;  %v1733_v19 = vmul.f32 %v3037_v45, %v3815_v47  ;;  %v1905_v17 = vpack.c.bf16 %v1855_v48, %v1853_v30  ;;  %v1660_v4 = vpop.xlane.xlu1 %1659 }
 0x444   : > { %v1999_v18 = vadd.f32 %v3853_v25, %v1998_v58  ;;  %3038 = vrcp.f32 %v1660_v4 }
 0x445   : > { %2761 = vmatmul.msk.bf16.gmra.mxu1 %vm927_vm1, %v1905_v17  ;;  %v1752_v53 = vpack.c.bf16 %v1733_v19, %v1732_v42 }
 0x446   : > { %v2069_v47 = vmax.f32 %v1999_v18, 0.0  ;;  %2784 = vmatmul.msk.bf16.gmra.mxu0 %vm729_vm0, %v3056_v54 }
 0x448   : > { %2746 = vmatmul.msk.bf16.gmra.mxu3 %vm1387_vm2, %v1752_v53 }
 0x44a   : > { %v1858_v38 = vpop.f32.mrf.mxu3  ;;  %v3039_v49 = vpop.eup %3038 }
 0x44b   : > { %v2000_v39 = vpop.f32.mrf.mxu1  ;;  %v1663_v1 = vpop.xlane.xlu2 %1662  ;;  %v1734_v37 = vmul.f32 %v3039_v49, %v3821_v31 }
 0x44c   : > { %v2001_v43 = vadd.f32 %v3853_v25, %v2000_v39  ;;  %3040 = vrcp.f32 %v1663_v1 }
 0x44e   : > { %v2070_v41 = vmax.f32 %v2001_v43, 0.0 }
 0x450   : > { %v2098_v35 = vpack.c.bf16 %v2070_v41, %v2069_v47 }
 0x452   : > { %2805 = vmatmul.msk.bf16.gmra.mxu2 %vm729_vm0, %v2098_v35  ;;  %v3041_v44 = vpop.eup %3040  ;;  %v1860_v13 = vpop.f32.mrf.mxu3 }
 0x453   : > { %v1735_v36 = vmul.f32 %v3041_v44, %v3826_v51  ;;  %v1906_v11 = vpack.c.bf16 %v1860_v13, %v1858_v38  ;;  %v2140_v51 = vpop.f32.mrf.mxu0  ;;  %v1666_v46 = vpop.xlane.xlu0 %1665 }
 0x454   : > { %3042 = vrcp.f32 %v1666_v46 }
 0x455   : > { %2762 = vmatmul.msk.bf16.gmra.mxu1 %vm927_vm1, %v1906_v11  ;;  %v1753_v52 = vpack.c.bf16 %v1735_v36, %v1734_v37  ;;  %v3061_v37 = vld [vmem:[%s3304_s26 + $0x58] sm:$0xff] }
 0x456   : > { %2785 = vmatmul.msk.bf16.gmra.mxu0 %vm729_vm0, %v3057_v61 }
 0x458   : > { %2747 = vmatmul.msk.bf16.gmra.mxu3 %vm1387_vm2, %v1753_v52 }
 0x45a   : > { %v3043_v0 = vpop.eup %3042 }
 0x45b   : > { %v2142_v63 = vpop.f32.mrf.mxu0  ;;  %v1736_v10 = vmul.f32 %v3043_v0, %v3830_v20 }
 0x463   : > { %v2145_v20 = vpop.f32.mrf.mxu0 }
 0x466   : > { %2786 = vmatmul.msk.bf16.gmra.mxu0 %vm729_vm0, %v3058_v26 }
 0x46b   : > { %v2147_v18 = vpop.f32.mrf.mxu0 }
 0x473   : > { %v2150_v7 = vpop.f32.mrf.mxu0 }
 0x476   : > { %2787 = vmatmul.msk.bf16.gmra.mxu0 %vm729_vm0, %v3059_v23 }
 0x492   : > { %v2003_v31 = vpop.f32.mrf.mxu1 }
 0x493   : > { %v2004_v24 = vadd.f32 %v3853_v25, %v2003_v31 }
 0x495   : > { %v2071_v32 = vmax.f32 %v2004_v24, 0.0 }
 0x49a   : > { %v1863_v56 = vpop.f32.mrf.mxu3  ;;  %v2005_v27 = vpop.f32.mrf.mxu1 }
 0x49b   : > { %v2006_v34 = vadd.f32 %v3853_v25, %v2005_v27 }
 0x49c   : > { %v1669_v33 = vpop.xlane.xlu1 %1668 }
 0x49d   : > { %3044 = vrcp.f32 %v1669_v33  ;;  %v2072_v2 = vmax.f32 %v2006_v34, 0.0 }
 0x49f   : > { %v2099_v55 = vpack.c.bf16 %v2072_v2, %v2071_v32  ;;  %v2152_v32 = vpop.f32.mrf.mxu0 }
 0x4a1   : > { %2806 = vmatmul.msk.bf16.gmra.mxu2 %vm729_vm0, %v2099_v55 }
 0x4a2   : > { %v1865_v22 = vpop.f32.mrf.mxu3  ;;  %v2008_v6 = vpop.f32.mrf.mxu1 }
 0x4a3   : > { %v3045_v5 = vpop.eup %3044  ;;  %v1907_v3 = vpack.c.bf16 %v1865_v22, %v1863_v56  ;;  %v2009_v16 = vadd.f32 %v3853_v25, %v2008_v6 }
 0x4a4   : > { %v1737_v8 = vmul.f32 %v3045_v5, %v3867_v50  ;;  %v1672_v21 = vpop.xlane.xlu2 %1671  ;;  %v3060_v50 = vld [vmem:[%s3304_s26 + $0x50] sm:$0xff] }
 0x4a5   : > { %v2289_v9 = vpop.f32.mrf.mxu2  ;;  %2763 = vmatmul.msk.bf16.gmra.mxu1 %vm927_vm1, %v1907_v3  ;;  %2788 = vmatmul.msk.bf16.gmra.mxu0 %vm729_vm0, %v3060_v50  ;;  %3046 = vrcp.f32 %v1672_v21  ;;  %v2073_v58 = vmax.f32 %v2009_v16, 0.0 }
 0x4a6   : > { %v2290_v14 = vadd.f32 %v2289_v9, %v2140_v51  ;;  %v1754_v30 = vpack.c.bf16 %v1737_v8, %v1736_v10 }
 0x4a7   : > { %v2155_v21 = vpop.f32.mrf.mxu0 }
 0x4a8   : > { %v2373_v59 = vadd.f32 %v3927_v15, %v2290_v14  ;;  %2748 = vmatmul.msk.bf16.gmra.mxu3 %vm1387_vm2, %v1754_v30 }
 0x4aa   : > { %v2405_v28 = vmax.f32 %v2373_v59, 0.0  ;;  %v1868_v57 = vpop.f32.mrf.mxu3  ;;  %v2010_v29 = vpop.f32.mrf.mxu1 }
 0x4ab   : > { %v2011_v40 = vadd.f32 %v3853_v25, %v2010_v29  ;;  %v1675_v45 = vpop.xlane.xlu0 %1674  ;;  %v3047_v4 = vpop.eup %3046 }
 0x4ac   : > { %2437 = vst [vmem:[%s3937_s28] sm:$0xff] %v2405_v28  ;;  %3048 = vrcp.f32 %v1675_v45  ;;  %v1738_v1 = vmul.f32 %v3047_v4, %v3877_v60 }
 0x4ad   : > { %v2291_v48 = vpop.f32.mrf.mxu2  ;;  %v2074_v42 = vmax.f32 %v2011_v40, 0.0  ;;  %v3063_v40 = vld [vmem:[%s3304_s26 + $0x68] sm:$0xff] }
 0x4ae   : > { %v2292_v19 = vadd.f32 %v2291_v48, %v2142_v63  ;;  %v3062_v63 = vld [vmem:[%s3304_s26 + $0x60] sm:$0xff] }
 0x4af   : > { %v2100_v17 = vpack.c.bf16 %v2074_v42, %v2073_v58  ;;  %v2157_v58 = vpop.f32.mrf.mxu0 }
 0x4b0   : > { %v2374_v53 = vadd.f32 %v3927_v15, %v2292_v19 }
 0x4b1   : > { %2807 = vmatmul.msk.bf16.gmra.mxu2 %vm729_vm0, %v2100_v17 }
 0x4b2   : > { %v2406_v62 = vmax.f32 %v2374_v53, 0.0  ;;  %v3049_v38 = vpop.eup %3048  ;;  %v1870_v39 = vpop.f32.mrf.mxu3 }
 0x4b3   : > { %v2013_v43 = vpop.f32.mrf.mxu1  ;;  %v1739_v47 = vmul.f32 %v3049_v38, %v3885_v12  ;;  %v1908_v41 = vpack.c.bf16 %v1870_v39, %v1868_v57 }
 0x4b4   : > { %2438 = vst [vmem:[%s3937_s28 + $0x8] sm:$0xff] %v2406_v62  ;;  %v2014_v36 = vadd.f32 %v3853_v25, %v2013_v43 }
 0x4b5   : > { %v2294_v35 = vpop.f32.mrf.mxu2  ;;  %2764 = vmatmul.msk.bf16.gmra.mxu1 %vm927_vm1, %v1908_v41  ;;  %v1755_v44 = vpack.c.bf16 %v1739_v47, %v1738_v1  ;;  %2789 = vmatmul.msk.bf16.gmra.mxu0 %vm729_vm0, %v3061_v37  ;;  %v3064_v41 = vld [vmem:[%s3304_s26 + $0x70] sm:$0xff] }
 0x4b6   : > { %v2295_v49 = vadd.f32 %v2294_v35, %v2145_v20  ;;  %v2075_v61 = vmax.f32 %v2014_v36, 0.0  ;;  %v3065_v35 = vld [vmem:[%s3304_s26 + $0x78] sm:$0xff]  ;;  %s2853_s26 = sshll.u32 %s3136_s27, 8  ;;  %s2470_s27 = scalar_lea.sflag [#allocation3], %s577_s2 }
 0x4b7   : > { %s2483_s30 = scalar_lea.hbm %s4109_s17, %s2853_s26 }
 0x4b8   : > { %v2375_v13 = vadd.f32 %v3927_v15, %v2295_v49  ;;  %2749 = vmatmul.msk.bf16.gmra.mxu3 %vm1387_vm2, %v1755_v44  ;;  %v2160_v49 = vpop.f32.mrf.mxu0  ;;  %s2486_s19 = sshll.u32 %s2483_s30, 4  ;;  %s2487_s19 = int_to_ptr.hbm [resolvable:$true] %s2486_s19 }
 0x4b9   : > { %s3080_s18 = sshra.s32 %s2487_s19, 4  ;;  %s3081_s18 = int_to_ptr.hbm [resolvable:$true] %s3080_s18 }
 0x4ba   : > { %v2407_v60 = vmax.f32 %v2375_v13, 0.0  ;;  %s3082_s23 = scalar_lea.hbm %s3081_s18, 256  ;;  %p3087_p1 = scmp.lt.s32.totalorder %s3081_s18, %s4109_s17 }
 0x4bb   : > { %v1873_v11 = vpop.f32.mrf.mxu3  ;;  %v2015_v12 = vpop.f32.mrf.mxu1  ;;  %p3083_p12 = scmp.ne.s32.totalorder %s3081_s18, %s3082_s23  ;;  %p3088_p2 = scmp.lt.s32.totalorder %s3086_s21, %s3082_s23 }
 0x4bc   : > { %2439 = vst [vmem:[%s3937_s28 + $0x10] sm:$0xff] %v2407_v60  ;;  %v2016_v52 = vadd.f32 %v3853_v25, %v2015_v12 }
 0x4bd   : > { %v2296_v54 = vpop.f32.mrf.mxu2  ;;  %p3084_p13 = pnand %p3083_p12, %p3278_p4  ;;  %p3089_p3 = por %p3088_p2, %p3087_p1 }
 0x4be   : > { %v2076_v26 = vmax.f32 %v2016_v52, 0.0  ;;  %v2297_v31 = vadd.f32 %v2296_v54, %v2147_v18 }
 0x4bf   : > { %p3085_p0 = pneg %p3084_p13 }
 0x4c0   : > { %v2101_v51 = vpack.c.bf16 %v2076_v26, %v2075_v61  ;;  %v2376_v46 = vadd.f32 %v3927_v15, %v2297_v31  ;;  %v2162_v44 = vpop.f32.mrf.mxu0 }
 0x4c1   : > { %p3090_p5 = pnand %p3089_p3, %p3085_p0 }
 0x4c2   : > { %v2408_v23 = vmax.f32 %v2376_v46, 0.0  ;;  %2808 = vmatmul.msk.bf16.gmra.mxu2 %vm729_vm0, %v2101_v51 }
 0x4c3   : > { %v1875_v24 = vpop.f32.mrf.mxu3  ;;  %v2018_v56 = vpop.f32.mrf.mxu1 }
 0x4c4   : > { %2440 = vst [vmem:[%s3937_s28 + $0x18] sm:$0xff] %v2408_v23  ;;  %v1909_v27 = vpack.c.bf16 %v1875_v24, %v1873_v11  ;;  %v2019_v55 = vadd.f32 %v3853_v25, %v2018_v56 }
 0x4c5   : > { %v2299_v34 = vpop.f32.mrf.mxu2  ;;  %2790 = vmatmul.msk.bf16.gmra.mxu0 %vm729_vm0, %v3062_v63 }
 0x4c6   : > { %v2300_v33 = vadd.f32 %v2299_v34, %v2150_v7  ;;  %2765 = vmatmul.msk.bf16.gmra.mxu1 %vm927_vm1, %v1909_v27  ;;  %v2077_v8 = vmax.f32 %v2019_v55, 0.0 }
 0x4c8   : > { %v2377_v2 = vadd.f32 %v3927_v15, %v2300_v33  ;;  %v2165_v37 = vpop.f32.mrf.mxu0 }
 0x4ca   : > { %v2409_v0 = vmax.f32 %v2377_v2, 0.0 }
 0x4cb   : > { %v1878_v5 = vpop.f32.mrf.mxu3  ;;  %v2020_v22 = vpop.f32.mrf.mxu1 }
 0x4cc   : > { %2441 = vst [vmem:[%s3937_s28 + $0x20] sm:$0xff] %v2409_v0  ;;  %v2021_v6 = vadd.f32 %v3853_v25, %v2020_v22 }
 0x4cd   : > { %v2301_v10 = vpop.f32.mrf.mxu2 }
 0x4ce   : > { %v2078_v3 = vmax.f32 %v2021_v6, 0.0  ;;  %v2302_v9 = vadd.f32 %v2301_v10, %v2152_v32 }
 0x4d0   : > { %v2102_v14 = vpack.c.bf16 %v2078_v3, %v2077_v8  ;;  %v2378_v30 = vadd.f32 %v3927_v15, %v2302_v9  ;;  %v2167_v23 = vpop.f32.mrf.mxu0 }
 0x4d2   : > { %v2410_v59 = vmax.f32 %v2378_v30, 0.0  ;;  %2809 = vmatmul.msk.bf16.gmra.mxu2 %vm729_vm0, %v2102_v14 }
 0x4d3   : > { %v1880_v20 = vpop.f32.mrf.mxu3  ;;  %v2023_v50 = vpop.f32.mrf.mxu1 }
 0x4d4   : > { %2442 = vst [vmem:[%s3937_s28 + $0x28] sm:$0xff] %v2410_v59  ;;  %v1910_v16 = vpack.c.bf16 %v1880_v20, %v1878_v5  ;;  %v2024_v45 = vadd.f32 %v3853_v25, %v2023_v50 }
 0x4d5   : > { %v2304_v28 = vpop.f32.mrf.mxu2  ;;  %2791 = vmatmul.msk.bf16.gmra.mxu0 %vm729_vm0, %v3063_v40 }
 0x4d6   : > { %v2305_v57 = vadd.f32 %v2304_v28, %v2155_v21  ;;  %2766 = vmatmul.msk.bf16.gmra.mxu1 %vm927_vm1, %v1910_v16  ;;  %v2079_v4 = vmax.f32 %v2024_v45, 0.0 }
 0x4d8   : > { %v2379_v29 = vadd.f32 %v3927_v15, %v2305_v57  ;;  %v2170_v0 = vpop.f32.mrf.mxu0 }
 0x4da   : > { %v2411_v48 = vmax.f32 %v2379_v29, 0.0 }
 0x4db   : > { %v1883_v42 = vpop.f32.mrf.mxu3  ;;  %v2025_v19 = vpop.f32.mrf.mxu1 }
 0x4dc   : > { %2443 = vst [vmem:[%s3937_s28 + $0x30] sm:$0xff] %v2411_v48  ;;  %v2026_v17 = vadd.f32 %v3853_v25, %v2025_v19 }
 0x4dd   : > { %v2306_v53 = vpop.f32.mrf.mxu2 }
 0x4de   : > { %v2080_v62 = vmax.f32 %v2026_v17, 0.0  ;;  %v2307_v18 = vadd.f32 %v2306_v53, %v2157_v58 }
 0x4e0   : > { %v2103_v38 = vpack.c.bf16 %v2080_v62, %v2079_v4  ;;  %v2380_v39 = vadd.f32 %v3927_v15, %v2307_v18  ;;  %v2172_v50 = vpop.f32.mrf.mxu0 }
 0x4e2   : > { %v2412_v43 = vmax.f32 %v2380_v39, 0.0  ;;  %2810 = vmatmul.msk.bf16.gmra.mxu2 %vm729_vm0, %v2103_v38 }
 0x4e3   : > { %v1885_v1 = vpop.f32.mrf.mxu3 }
 0x4e4   : > { %2444 = vst [vmem:[%s3937_s28 + $0x38] sm:$0xff] %v2412_v43  ;;  %v1911_v47 = vpack.c.bf16 %v1885_v1, %v1883_v42 }
 0x4e5   : > { %2792 = vmatmul.msk.bf16.gmra.mxu0 %vm729_vm0, %v3064_v41 }
 0x4e6   : > { %2767 = vmatmul.msk.bf16.gmra.mxu1 %vm927_vm1, %v1911_v47 }
 0x4e8   : > { %v2175_v53 = vpop.f32.mrf.mxu0 }
 0x4f5   : > { %2793 = vmatmul.msk.bf16.gmra.mxu0 %vm729_vm0, %v3065_v35  ;;  %v2177_v35 = vpop.f32.mrf.mxu0 }
 0x522   : > { %v2028_v13 = vpop.f32.mrf.mxu1 }
 0x523   : > { %v2029_v12 = vadd.f32 %v3853_v25, %v2028_v13 }
 0x524   : > { %v2309_v36 = vpop.f32.mrf.mxu2 }
 0x525   : > { %v2310_v60 = vadd.f32 %v2309_v36, %v2160_v49  ;;  %v2081_v31 = vmax.f32 %v2029_v12, 0.0 }
 0x527   : > { %v2381_v11 = vadd.f32 %v3927_v15, %v2310_v60 }
 0x529   : > { %v2413_v52 = vmax.f32 %v2381_v11, 0.0 }
 0x52a   : > { %v2030_v54 = vpop.f32.mrf.mxu1 }
 0x52b   : > { %v1888_v7 = vpop.f32.mrf.mxu3  ;;  %2445 = vst [vmem:[%s3937_s28 + $0x40] sm:$0xff] %v2413_v52  ;;  %v2031_v61 = vadd.f32 %v3853_v25, %v2030_v54 }
 0x52c   : > { %v2311_v26 = vpop.f32.mrf.mxu2 }
 0x52d   : > { %v2082_v51 = vmax.f32 %v2031_v61, 0.0  ;;  %v2312_v46 = vadd.f32 %v2311_v26, %v2162_v44  ;;  %v2180_v61 = vpop.f32.mrf.mxu0 }
 0x52f   : > { %v2104_v24 = vpack.c.bf16 %v2082_v51, %v2081_v31  ;;  %v2382_v56 = vadd.f32 %v3927_v15, %v2312_v46 }
 0x531   : > { %v2414_v27 = vmax.f32 %v2382_v56, 0.0  ;;  %2811 = vmatmul.msk.bf16.gmra.mxu2 %vm729_vm0, %v2104_v24 }
 0x532   : > { %v2033_v33 = vpop.f32.mrf.mxu1 }
 0x533   : > { %v1890_v34 = vpop.f32.mrf.mxu3  ;;  %2446 = vst [vmem:[%s3937_s28 + $0x48] sm:$0xff] %v2414_v27  ;;  %v2034_v5 = vadd.f32 %v3853_v25, %v2033_v33 }
 0x534   : > { %v1912_v32 = vpack.c.bf16 %v1890_v34, %v1888_v7  ;;  %v2314_v2 = vpop.f32.mrf.mxu2 }
 0x535   : > { %v2315_v63 = vadd.f32 %v2314_v2, %v2165_v37  ;;  %v2083_v9 = vmax.f32 %v2034_v5, 0.0  ;;  %v2182_v34 = vpop.f32.mrf.mxu0 }
 0x536   : > { %2768 = vmatmul.msk.bf16.gmra.mxu1 %vm927_vm1, %v1912_v32 }
 0x537   : > { %v2383_v55 = vadd.f32 %v3927_v15, %v2315_v63 }
 0x539   : > { %v2415_v22 = vmax.f32 %v2383_v55, 0.0 }
 0x53a   : > { %v2035_v10 = vpop.f32.mrf.mxu1 }
 0x53b   : > { %v1893_v6 = vpop.f32.mrf.mxu3  ;;  %2447 = vst [vmem:[%s3937_s28 + $0x50] sm:$0xff] %v2415_v22  ;;  %v2036_v8 = vadd.f32 %v3853_v25, %v2035_v10 }
 0x53c   : > { %v2316_v3 = vpop.f32.mrf.mxu2 }
 0x53d   : > { %v2084_v14 = vmax.f32 %v2036_v8, 0.0  ;;  %v2317_v30 = vadd.f32 %v2316_v3, %v2167_v23 }
 0x53f   : > { %v2105_v21 = vpack.c.bf16 %v2084_v14, %v2083_v9  ;;  %v2384_v59 = vadd.f32 %v3927_v15, %v2317_v30 }
 0x541   : > { %v2416_v20 = vmax.f32 %v2384_v59, 0.0  ;;  %2812 = vmatmul.msk.bf16.gmra.mxu2 %vm729_vm0, %v2105_v21 }
 0x543   : > { %v1895_v16 = vpop.f32.mrf.mxu3  ;;  %v2038_v28 = vpop.f32.mrf.mxu1  ;;  %2448 = vst [vmem:[%s3937_s28 + $0x58] sm:$0xff] %v2416_v20 }
 0x544   : > { %v1913_v57 = vpack.c.bf16 %v1895_v16, %v1893_v6  ;;  %v2039_v48 = vadd.f32 %v3853_v25, %v2038_v28  ;;  %v2185_v6 = vpop.f32.mrf.mxu0 }
 0x545   : > { %v2319_v29 = vpop.f32.mrf.mxu2 }
 0x546   : > { %v2320_v40 = vadd.f32 %v2319_v29, %v2170_v0  ;;  %2769 = vmatmul.msk.bf16.gmra.mxu1 %vm927_vm1, %v1913_v57  ;;  %v2085_v4 = vmax.f32 %v2039_v48, 0.0 }
 0x548   : > { %v2385_v45 = vadd.f32 %v3927_v15, %v2320_v40 }
 0x54a   : > { %v2417_v58 = vmax.f32 %v2385_v45, 0.0 }
 0x54b   : > { %v2040_v42 = vpop.f32.mrf.mxu1 }
 0x54c   : > { %2449 = vst [vmem:[%s3937_s28 + $0x60] sm:$0xff] %v2417_v58  ;;  %v2041_v19 = vadd.f32 %v3853_v25, %v2040_v42  ;;  %v2187_v10 = vpop.f32.mrf.mxu0 }
 0x54d   : > { %v2321_v17 = vpop.f32.mrf.mxu2 }
 0x54e   : > { %v2086_v62 = vmax.f32 %v2041_v19, 0.0  ;;  %v2322_v18 = vadd.f32 %v2321_v17, %v2172_v50 }
 0x550   : > { %v2106_v38 = vpack.c.bf16 %v2086_v62, %v2085_v4  ;;  %v2386_v39 = vadd.f32 %v3927_v15, %v2322_v18 }
 0x552   : > { %v2418_v43 = vmax.f32 %v2386_v39, 0.0  ;;  %2813 = vmatmul.msk.bf16.gmra.mxu2 %vm729_vm0, %v2106_v38 }
 0x553   : > { %v2043_v1 = vpop.f32.mrf.mxu1 }
 0x554   : > { %2450 = vst [vmem:[%s3937_s28 + $0x68] sm:$0xff] %v2418_v43  ;;  %v2044_v44 = vadd.f32 %v3853_v25, %v2043_v1  ;;  %v2190_v9 = vpop.f32.mrf.mxu0 }
 0x555   : > { %v2324_v47 = vpop.f32.mrf.mxu2 }
 0x556   : > { %v2325_v41 = vadd.f32 %v2324_v47, %v2175_v53  ;;  %v2087_v11 = vmax.f32 %v2044_v44, 0.0 }
 0x558   : > { %v2387_v49 = vadd.f32 %v3927_v15, %v2325_v41 }
 0x55a   : > { %v2419_v13 = vmax.f32 %v2387_v49, 0.0 }
 0x55b   : > { %v2045_v37 = vpop.f32.mrf.mxu1 }
 0x55c   : > { %2451 = vst [vmem:[%s3937_s28 + $0x70] sm:$0xff] %v2419_v13  ;;  %v2046_v36 = vadd.f32 %v3853_v25, %v2045_v37  ;;  %v2192_v40 = vpop.f32.mrf.mxu0 }
 0x55d   : > { %v2326_v60 = vpop.f32.mrf.mxu2 }
 0x55e   : > { %v2088_v12 = vmax.f32 %v2046_v36, 0.0  ;;  %v2327_v52 = vadd.f32 %v2326_v60, %v2177_v35 }
 0x560   : > { %v2107_v7 = vpack.c.bf16 %v2088_v12, %v2087_v11  ;;  %v2388_v54 = vadd.f32 %v3927_v15, %v2327_v52 }
 0x562   : > { %v2420_v26 = vmax.f32 %v2388_v54, 0.0  ;;  %2814 = vmatmul.msk.bf16.gmra.mxu2 %vm729_vm0, %v2107_v7 }
 0x563   : > { %v2048_v31 = vpop.f32.mrf.mxu1 }
 0x564   : > { %2452 = vst [vmem:[%s3937_s28 + $0x78] sm:$0xff] %v2420_v26  ;;  %v2049_v24 = vadd.f32 %v3853_v25, %v2048_v31  ;;  %v2195_v4 = vpop.f32.mrf.mxu0 }
 0x565   : > { %v2329_v51 = vpop.f32.mrf.mxu2 }
 0x566   : > { %v2330_v46 = vadd.f32 %v2329_v51, %v2180_v61  ;;  %v2089_v2 = vmax.f32 %v2049_v24, 0.0 }
 0x568   : > { %v2389_v23 = vadd.f32 %v3927_v15, %v2330_v46 }
 0x56a   : > { %v2421_v56 = vmax.f32 %v2389_v23, 0.0 }
 0x56b   : > { %v2050_v27 = vpop.f32.mrf.mxu1 }
 0x56c   : > { %2453 = vst [vmem:[%s3937_s28 + $0x80] sm:$0xff] %v2421_v56  ;;  %v2051_v33 = vadd.f32 %v3853_v25, %v2050_v27  ;;  %v2197_v13 = vpop.f32.mrf.mxu0 }
 0x56d   : > { %v2331_v32 = vpop.f32.mrf.mxu2 }
 0x56e   : > { %v2090_v63 = vmax.f32 %v2051_v33, 0.0  ;;  %v2332_v55 = vadd.f32 %v2331_v32, %v2182_v34 }
 0x570   : > { %v2108_v0 = vpack.c.bf16 %v2090_v63, %v2089_v2  ;;  %v2390_v5 = vadd.f32 %v3927_v15, %v2332_v55 }
 0x572   : > { %v2422_v22 = vmax.f32 %v2390_v5, 0.0  ;;  %2815 = vmatmul.msk.bf16.gmra.mxu2 %vm729_vm0, %v2108_v0 }
 0x574   : > { %2454 = vst [vmem:[%s3937_s28 + $0x88] sm:$0xff] %v2422_v22  ;;  %v2200_v12 = vpop.f32.mrf.mxu0 }
 0x57c   : > { %v2202_v31 = vpop.f32.mrf.mxu0 }
 0x584   : > { %v2205_v27 = vpop.f32.mrf.mxu0 }
 0x58c   : > { %v2207_v55 = vpop.f32.mrf.mxu0 }
 0x5b3   : > { %v2053_v8 = vpop.f32.mrf.mxu1 }
 0x5b4   : > { %v2334_v3 = vpop.f32.mrf.mxu2  ;;  %v2054_v21 = vadd.f32 %v3853_v25, %v2053_v8 }
 0x5b5   : > { %v2335_v14 = vadd.f32 %v2334_v3, %v2185_v6 }
 0x5b6   : > { %v2091_v28 = vmax.f32 %v2054_v21, 0.0 }
 0x5b7   : > { %v2391_v30 = vadd.f32 %v3927_v15, %v2335_v14 }
 0x5b9   : > { %v2423_v59 = vmax.f32 %v2391_v30, 0.0 }
 0x5bb   : > { %v2055_v20 = vpop.f32.mrf.mxu1  ;;  %2455 = vst [vmem:[%s3937_s28 + $0x90] sm:$0xff] %v2423_v59 }
 0x5bc   : > { %v2056_v50 = vadd.f32 %v3853_v25, %v2055_v20  ;;  %v2336_v16 = vpop.f32.mrf.mxu2 }
 0x5bd   : > { %v2337_v29 = vadd.f32 %v2336_v16, %v2187_v10  ;;  %v2210_v10 = vpop.f32.mrf.mxu0 }
 0x5be   : > { %v2092_v57 = vmax.f32 %v2056_v50, 0.0 }
 0x5bf   : > { %v2392_v48 = vadd.f32 %v3927_v15, %v2337_v29 }
 0x5c0   : > { %v2109_v45 = vpack.c.bf16 %v2092_v57, %v2091_v28 }
 0x5c1   : > { %v2424_v58 = vmax.f32 %v2392_v48, 0.0 }
 0x5c2   : > { %2816 = vmatmul.msk.bf16.gmra.mxu2 %vm729_vm0, %v2109_v45 }
 0x5c3   : > { %v2058_v42 = vpop.f32.mrf.mxu1  ;;  %2456 = vst [vmem:[%s3937_s28 + $0x98] sm:$0xff] %v2424_v58 }
 0x5c4   : > { %v2339_v19 = vpop.f32.mrf.mxu2  ;;  %v2059_v62 = vadd.f32 %v3853_v25, %v2058_v42 }
 0x5c5   : > { %v2340_v17 = vadd.f32 %v2339_v19, %v2190_v9  ;;  %v2212_v14 = vpop.f32.mrf.mxu0 }
 0x5c6   : > { %v2093_v1 = vmax.f32 %v2059_v62, 0.0 }
 0x5c7   : > { %v2393_v53 = vadd.f32 %v3927_v15, %v2340_v17 }
 0x5c9   : > { %v2425_v18 = vmax.f32 %v2393_v53, 0.0 }
 0x5cb   : > { %v2060_v38 = vpop.f32.mrf.mxu1  ;;  %2457 = vst [vmem:[%s3937_s28 + $0xa0] sm:$0xff] %v2425_v18 }
 0x5cc   : > { %v2061_v39 = vadd.f32 %v3853_v25, %v2060_v38  ;;  %v2341_v43 = vpop.f32.mrf.mxu2 }
 0x5cd   : > { %v2342_v41 = vadd.f32 %v2341_v43, %v2192_v40  ;;  %v2215_v16 = vpop.f32.mrf.mxu0 }
 0x5ce   : > { %v2094_v47 = vmax.f32 %v2061_v39, 0.0 }
 0x5cf   : > { %v2394_v49 = vadd.f32 %v3927_v15, %v2342_v41 }
 0x5d0   : > { %v2110_v35 = vpack.c.bf16 %v2094_v47, %v2093_v1 }
 0x5d1   : > { %v2426_v44 = vmax.f32 %v2394_v49, 0.0 }
 0x5d2   : > { %2817 = vmatmul.msk.bf16.gmra.mxu2 %vm729_vm0, %v2110_v35 }
 0x5d3   : > { %2458 = vst [vmem:[%s3937_s28 + $0xa8] sm:$0xff] %v2426_v44 }
 0x5d5   : > { %v2344_v37 = vpop.f32.mrf.mxu2  ;;  %v2217_v45 = vpop.f32.mrf.mxu0 }
 0x5d6   : > { %v2345_v36 = vadd.f32 %v2344_v37, %v2195_v4 }
 0x5d8   : > { %v2395_v60 = vadd.f32 %v3927_v15, %v2345_v36 }
 0x5da   : > { %v2427_v11 = vmax.f32 %v2395_v60, 0.0 }
 0x5dc   : > { %2459 = vst [vmem:[%s3937_s28 + $0xb0] sm:$0xff] %v2427_v11 }
 0x5dd   : > { %v2346_v25 = vpop.f32.mrf.mxu2 }
 0x5de   : > { %v2347_v52 = vadd.f32 %v2346_v25, %v2197_v13 }
 0x5e0   : > { %v2396_v7 = vadd.f32 %v3927_v15, %v2347_v52 }
 0x5e2   : > { %v2428_v54 = vmax.f32 %v2396_v7, 0.0 }
 0x5e4   : > { %2460 = vst [vmem:[%s3937_s28 + $0xb8] sm:$0xff] %v2428_v54 }
 0x5e5   : > { %v2349_v61 = vpop.f32.mrf.mxu2 }
 0x5e6   : > { %v2350_v26 = vadd.f32 %v2349_v61, %v2200_v12 }
 0x5e8   : > { %v2397_v51 = vadd.f32 %v3927_v15, %v2350_v26 }
 0x5ea   : > { %v2429_v46 = vmax.f32 %v2397_v51, 0.0 }
 0x5ec   : > { %2461 = vst [vmem:[%s3937_s28 + $0xc0] sm:$0xff] %v2429_v46 }
 0x5ed   : > { %v2351_v23 = vpop.f32.mrf.mxu2 }
 0x5ee   : > { %v2352_v24 = vadd.f32 %v2351_v23, %v2202_v31 }
 0x5f0   : > { %v2398_v56 = vadd.f32 %v3927_v15, %v2352_v24 }
 0x5f2   : > { %v2430_v34 = vmax.f32 %v2398_v56, 0.0 }
 0x5f4   : > { %2462 = vst [vmem:[%s3937_s28 + $0xc8] sm:$0xff] %v2430_v34 }
 0x5f5   : > { %v2354_v33 = vpop.f32.mrf.mxu2 }
 0x5f6   : > { %v2355_v32 = vadd.f32 %v2354_v33, %v2205_v27 }
 0x5f8   : > { %v2399_v2 = vadd.f32 %v3927_v15, %v2355_v32 }
 0x5fa   : > { %v2431_v63 = vmax.f32 %v2399_v2, 0.0 }
 0x5fc   : > { %2463 = vst [vmem:[%s3937_s28 + $0xd0] sm:$0xff] %v2431_v63 }
 0x5fd   : > { %v2356_v0 = vpop.f32.mrf.mxu2 }
 0x5fe   : > { %v2357_v5 = vadd.f32 %v2356_v0, %v2207_v55 }
 0x600   : > { %v2400_v22 = vadd.f32 %v3927_v15, %v2357_v5 }
 0x602   : > { %v2432_v6 = vmax.f32 %v2400_v22, 0.0 }
 0x604   : > { %2464 = vst [vmem:[%s3937_s28 + $0xd8] sm:$0xff] %v2432_v6 }
 0x645   : > { %v2359_v8 = vpop.f32.mrf.mxu2 }
 0x646   : > { %v2360_v3 = vadd.f32 %v2359_v8, %v2210_v10 }
 0x648   : > { %v2401_v9 = vadd.f32 %v3927_v15, %v2360_v3 }
 0x64a   : > { %v2433_v30 = vmax.f32 %v2401_v9, 0.0 }
 0x64c   : > { %2465 = vst [vmem:[%s3937_s28 + $0xe0] sm:$0xff] %v2433_v30 }
 0x64d   : > { %v2361_v21 = vpop.f32.mrf.mxu2 }
 0x64e   : > { %v2362_v59 = vadd.f32 %v2361_v21, %v2212_v14 }
 0x650   : > { %v2402_v20 = vadd.f32 %v3927_v15, %v2362_v59 }
 0x652   : > { %v2434_v50 = vmax.f32 %v2402_v20, 0.0 }
 0x654   : > { %2466 = vst [vmem:[%s3937_s28 + $0xe8] sm:$0xff] %v2434_v50 }
 0x655   : > { %v2364_v28 = vpop.f32.mrf.mxu2 }
 0x656   : > { %v2365_v57 = vadd.f32 %v2364_v28, %v2215_v16 }
 0x658   : > { %v2403_v29 = vadd.f32 %v3927_v15, %v2365_v57 }
 0x65a   : > { %v2435_v40 = vmax.f32 %v2403_v29, 0.0 }
 0x65c   : > { %2467 = vst [vmem:[%s3937_s28 + $0xf0] sm:$0xff] %v2435_v40 }
 0x65d   : > { %v2366_v48 = vpop.f32.mrf.mxu2 }
 0x65e   : > { %v2367_v58 = vadd.f32 %v2366_v48, %v2217_v45 }
 0x660   : > { %v2404_v42 = vadd.f32 %v3927_v15, %v2367_v58 }
 0x662   : > { %v2436_v19 = vmax.f32 %v2404_v42, 0.0 }
 0x664   : > { %2468 = vst [vmem:[%s3937_s28 + $0xf8] sm:$0xff] %v2436_v19 }
 0x665   : > { %3093 = shalt.err (!%p3090_p5)
}
 0x666   : > { %s3146_s2 = smov 128   ;;  %s3147_s28 = smov 8  }
 0x667   : > { %2858 = dma.vmem_to_hbm [thread:$0]  (%p3278_p4), %s2485_s20, 4096, %s2487_s19, %s2470_s27, %s3146_s2, %s3146_s2, %s3147_s28  }
 0x668 PF: > { %p2864_p6 = scmp.ge.s32.totalorder %s3144_s29, 2  ;;  %s2501_s0 = sand.u32 1, %s3124_s24  }
 0x669   : > { %s2502_s26 = scalar_lea.sflag [#allocation3], %s2501_s0 }
 0x66a   : > { %p2861_p7 = pnand %p2864_p6, %p3285_p8 }
 0x66c   : > { %p2862_p9 = pneg %p2861_p7 }
 0x66e   : > { %3119 = dma.done.wait (%p2862_p9), %s2502_s26, 4096  }
 0x66f   : > { %3121 = vsyncadd (%p2862_p9), %s2502_s26, 4294963200  ;;  %s30_s29 = sadd.s32 1, %s3144_s29   ;;  %s4130_s18 = sld [smem:[#allocation5_spill]] }
 0x670   : > { %p27_p10 = scmp.ge.s32.totalorder %s30_s29, 4   ;;  %s4131_s26 = sld [smem:[#allocation9_spill]] }
 0x671   : > { %s4132_s27 = sld [smem:[#allocation6_spill]]  ;;  %s4134_s24 = smov %s3128_s25 }
 0x672   : > { %s4133_s28 = sld [smem:[#allocation7_spill]]  ;;  %29 = sbr.rel (!%p27_p10) target bundleno = 9 (0x9), region = 126 }
 0x675   : > { %s4135_s25 = smov %s4130_s18 }
 0x677   :  { %2508 = vsyncpa [#allocation3], 1 }
 0x678   :  { %2510 = vsyncpa [#allocation3 + $0x1], 1 }

</bundles_post_ra>
